<compile_context>
chip_gen: v7x
topology: tpu7x:2x2x1
jax: 0.10.0
libtpu: 0.0.40
codegen_flags: <defaults>
</compile_context>

<pallas_src>
import jax
import jax.numpy as jnp
from jax import lax
from jax.experimental import pallas as pl
from jax.experimental.pallas import tpu as pltpu
import numpy as np


def _round_up(x, m):
    return ((x + m - 1) // m) * m


def _vmem_capacity_bytes():
    """Physical VMEM per TensorCore (v5e/v6e: 128 MiB, v7x: 64 MiB), with a safe fallback."""
    try:
        info_fn = getattr(pltpu, "get_tpu_info", None)
        if info_fn is not None:
            cap = getattr(info_fn(), "vmem_capacity_bytes", None)
            if cap:
                return int(cap)
    except Exception:
        pass
    return 64 * 1024 * 1024


def _vmem_estimate_bytes(TH, W, Cin, Cmid_p, Gp, G, x_bytes):
    """Rough per-step VMEM footprint: double-buffered pipelined operands + scratch + headroom."""
    db = 2
    est = 0
    est += db * TH * W * Cin * x_bytes            # x tile
    est += db * 2 * W * Cin * x_bytes             # 2 halo rows
    est += db * (2 * Cin + 2 * Cmid_p) * 4        # folded BN scale / bias
    est += db * Cin * Cmid_p * 2                  # w1 (bf16)
    est += db * 9 * Cmid_p * Gp * 2               # w2 (bf16)
    est += db * TH * W * G * 4                    # output tile
    est += (TH + 2) * (W + 2) * Cmid_p * 4        # padded-z scratch (f32)
    est += TH * W * Gp * 4                        # conv2 accumulator
    est += 4 * TH * W * max(Cin, Cmid_p) * 4      # in-flight values / spill headroom
    return est


def _pick_tile_h(H, W, Cin, Cmid_p, Gp, G, x_bytes, budget):
    for th in sorted((d for d in range(1, H + 1) if H % d == 0), reverse=True):
        if _vmem_estimate_bytes(th, W, Cin, Cmid_p, Gp, G, x_bytes) <= budget:
            return th
    return 1


# --------------------------------------------------------------------------
# Pallas kernel: BN1+ReLU -> 1x1 conv -> BN2+ReLU -> 3x3 conv (pad=1), one H-band per step.
# --------------------------------------------------------------------------
def _make_kernel(TH, W, Cin, Cmid_p, Gp, G):
    def kernel(x_ref, xh_ref, s1_ref, b1_ref, w1_ref, s2_ref, b2_ref, w2_ref,
               o_ref, pad_ref, acc_ref):
        t = pl.program_id(1)

        s1 = s1_ref[...]                      # (1, Cin) f32
        b1 = b1_ref[...]
        s2 = s2_ref[...]                      # (1, Cmid_p) f32
        b2 = b2_ref[...]
        w1 = w1_ref[...]                      # (Cin, Cmid_p) bf16

        def bottleneck(x2d):
            # BN1 (folded) + ReLU -> 1x1 conv -> BN2 (folded) + ReLU.
            # f32 elementwise math, bf16 MXU operands, f32 accumulation.
            y = jnp.maximum(x2d.astype(jnp.float32) * s1 + b1, 0.0)
            h = jnp.dot(y.astype(jnp.bfloat16), w1, preferred_element_type=jnp.float32)
            return jnp.maximum(h * s2 + b2, 0.0)               # (rows, Cmid_p) f32

        # ---- interior TH rows of this band -----------------------------------
        z_main = bottleneck(x_ref[...].reshape(TH * W, Cin))    # (TH*W, Cmid_p)

        # ---- 2 halo rows, recomputed and masked at the image boundary --------
        z_halo = bottleneck(xh_ref[...].reshape(2 * W, Cin))    # (2W, Cmid_p)
        top_valid = (t > 0).astype(jnp.float32)
        bot_valid = (t < pl.num_programs(1) - 1).astype(jnp.float32)
        z_top = z_halo[:W, :] * top_valid
        z_bot = z_halo[W:, :] * bot_valid

        # ---- fill the (TH+2, W+2, Cmid_p) zero-padded scratch -----------------
        # Every row that will be read is fully rewritten here (full width, zero
        # border columns included): no full-buffer zeroing, no partial-column
        # stores, no stale data across grid steps.
        zc1 = jnp.zeros((1, 1, Cmid_p), jnp.float32)
        zcm = jnp.zeros((TH, 1, Cmid_p), jnp.float32)
        pad_ref[0:1, :, :] = jnp.concatenate(
            [zc1, z_top.reshape(1, W, Cmid_p), zc1], axis=1)
        pad_ref[TH + 1:TH + 2, :, :] = jnp.concatenate(
            [zc1, z_bot.reshape(1, W, Cmid_p), zc1], axis=1)
        pad_ref[1:TH + 1, :, :] = jnp.concatenate(
            [zcm, z_main.reshape(TH, W, Cmid_p), zcm], axis=1)

        # ---- 3x3 conv (padding=1): 9 accumulated tap matmuls (no im2col slab) --
        for idx in range(9):
            ky, kx = idx // 3, idx % 3
            tap = pad_ref[ky:ky + TH, kx:kx + W, :].reshape(TH * W, Cmid_p)
            part = jnp.dot(tap.astype(jnp.bfloat16), w2_ref[idx],
                           preferred_element_type=jnp.float32)   # (TH*W, Gp)
            if idx == 0:
                acc_ref[...] = part
            else:
                acc_ref[...] += part

        # Unpadded G-channel store (no Gp->G slice round trip in the wrapper).
        o_ref[...] = acc_ref[:, :G].reshape(1, 1, TH * W, G).astype(o_ref.dtype)

    return kernel


# --------------------------------------------------------------------------
# NHWC-native wrapper (preferred entry point).
# --------------------------------------------------------------------------
def dense_layer_forward_nhwc(inputs, params, drop_rate=0.0, tile_h=None):
    """Forward of _DenseLayer on a (list of) NHWC feature maps.  Returns NHWC."""
    if not isinstance(inputs, (list, tuple)):
        inputs = [inputs]
    # torch.cat(inputs, dim=1) == channel concat in NHWC.
    x = jnp.concatenate([jnp.asarray(v) for v in inputs], axis=-1)   # (N, H, W, Cin)
    N, H, W, Cin = (int(d) for d in x.shape)

    eps = 1e-5
    (g1, bta1, m1, v1, w1_pt, g2, bta2, m2, v2, w2_pt) = params
    Cmid = int(w1_pt.shape[0])          # bn_size * growth_rate
    G = int(w2_pt.shape[0])             # growth_rate
    Cmid_p = _round_up(Cmid, 128)
    Gp = _round_up(G, 128)

    # ---- fold eval-mode BatchNorm into per-channel scale/bias (f32) -----------
    inv1 = 1.0 / jnp.sqrt(v1 + eps)
    s1 = (g1 * inv1).astype(jnp.float32).reshape(1, Cin)
    b1 = (bta1 - m1 * g1 * inv1).astype(jnp.float32).reshape(1, Cin)
    inv2 = 1.0 / jnp.sqrt(v2 + eps)
    s2 = jnp.zeros((1, Cmid_p), jnp.float32).at[0, :Cmid].set(g2 * inv2)
    b2 = jnp.zeros((1, Cmid_p), jnp.float32).at[0, :Cmid].set(bta2 - m2 * g2 * inv2)

    # ---- 1x1 conv weight: OIHW -> (Cin, Cmid_p) bf16 ---------------------------
    w1 = jnp.transpose(w1_pt[:, :, 0, 0], (1, 0))
    w1 = jnp.pad(w1, ((0, 0), (0, Cmid_p - Cmid))).astype(jnp.bfloat16)

    # ---- 3x3 conv weight: OIHW -> (9, Cmid_p, Gp) bf16 (tap-major) -------------
    w2 = jnp.transpose(w2_pt, (2, 3, 1, 0))                           # (3,3,Cmid,G)
    w2 = jnp.pad(w2, ((0, 0), (0, 0), (0, Cmid_p - Cmid), (0, Gp - G)))
    w2 = w2.reshape(9, Cmid_p, Gp).astype(jnp.bfloat16)

    # ---- generation-aware H tile and VMEM budget --------------------------------
    x_bytes = jnp.dtype(x.dtype).itemsize
    cap = _vmem_capacity_bytes()
    if tile_h is None:
        tile_h = _pick_tile_h(H, W, Cin, Cmid_p, Gp, G, x_bytes, budget=int(cap * 0.45))
    TH = int(tile_h)
    if H % TH != 0:
        # TODO(synk): support a ragged last H tile; for now require TH | H.
        raise ValueError(f"tile_h={TH} must divide H={H}")
    n_tiles = H // TH
    est = _vmem_estimate_bytes(TH, W, Cin, Cmid_p, Gp, G, x_bytes)
    vmem_limit = int(min(cap * 0.85, max(32 * 1024 * 1024, 2 * est)))

    # ---- 2 halo rows per tile (rows t*TH-1 and t*TH+TH; zero outside the image) --
    zero_row = jnp.zeros((N, 1, W, Cin), x.dtype)
    top = jnp.concatenate([zero_row, x[:, TH - 1:H - 1:TH]], axis=1)  # (N, n_tiles, W, Cin)
    bot = jnp.concatenate([x[:, TH:H:TH], zero_row], axis=1)          # (N, n_tiles, W, Cin)
    xh = jnp.stack([top, bot], axis=2).reshape(N, n_tiles, 2 * W, Cin)

    kernel = _make_kernel(TH, W, Cin, Cmid_p, Gp, G)

    out = pl.pallas_call(
        kernel,
        out_shape=jax.ShapeDtypeStruct((N, n_tiles, TH * W, G), x.dtype),
        grid=(N, n_tiles),
        in_specs=[
            pl.BlockSpec((1, TH, W, Cin), lambda n, t: (n, t, 0, 0)),       # x band
            pl.BlockSpec((1, 1, 2 * W, Cin), lambda n, t: (n, t, 0, 0)),    # halo rows
            pl.BlockSpec((1, Cin), lambda n, t: (0, 0)),                    # s1
            pl.BlockSpec((1, Cin), lambda n, t: (0, 0)),                    # b1
            pl.BlockSpec((Cin, Cmid_p), lambda n, t: (0, 0)),               # w1
            pl.BlockSpec((1, Cmid_p), lambda n, t: (0, 0)),                 # s2
            pl.BlockSpec((1, Cmid_p), lambda n, t: (0, 0)),                 # b2
            pl.BlockSpec((9, Cmid_p, Gp), lambda n, t: (0, 0, 0)),          # w2
        ],
        out_specs=pl.BlockSpec((1, 1, TH * W, G), lambda n, t: (n, t, 0, 0)),
        scratch_shapes=[
            pltpu.VMEM((TH + 2, W + 2, Cmid_p), jnp.float32),               # padded z
            pltpu.VMEM((TH * W, Gp), jnp.float32),                          # conv2 acc
        ],
        compiler_params=pltpu.CompilerParams(
            dimension_semantics=("parallel", "parallel"),
            vmem_limit_bytes=vmem_limit,
        ),
    )(x, xh, s1, b1, w1, s2, b2, w2)

    # TODO(synk): training-mode dropout (F.dropout with training=True) not implemented;
    # drop_rate > 0 in eval mode is an identity, which is what we do.
    del drop_rate

    # (N, n_tiles, TH*W, G) -> (N, H, W, G) is a contiguous (free) metadata reshape.
    return out.reshape(N, H, W, G)


# --------------------------------------------------------------------------
# PyTorch-layout wrapper (NCHW in / NCHW out) — interface compatibility.
# --------------------------------------------------------------------------
def dense_layer_forward(inputs, params, drop_rate=0.0, tile_h=None):
    if not isinstance(inputs, (list, tuple)):
        inputs = [inputs]
    inputs_nhwc = [jnp.transpose(x, (0, 2, 3, 1)) for x in inputs]
    out_nhwc = dense_layer_forward_nhwc(inputs_nhwc, params, drop_rate, tile_h=tile_h)
    return jnp.transpose(out_nhwc, (0, 3, 1, 2))


# --------------------------------------------------------------------------
# Plain-JAX reference (validation only).  Mirrors the kernel's bf16 MXU operands
# (f32 accumulation) so a tight tolerance still catches real bugs.
# --------------------------------------------------------------------------
def reference_forward(x_nchw, params):
    eps = 1e-5
    (g1, bta1, m1, v1, w1_pt, g2, bta2, m2, v2, w2_pt) = params

    def bn(x, g, b, m, v):
        return (x - m[None, :, None, None]) / jnp.sqrt(v + eps)[None, :, None, None] \
               * g[None, :, None, None] + b[None, :, None, None]

    y = jnp.maximum(bn(x_nchw, g1, bta1, m1, v1), 0.0)
    h = lax.conv_general_dilated(y.astype(jnp.bfloat16), w1_pt.astype(jnp.bfloat16),
                                 (1, 1), 'VALID',
                                 dimension_numbers=('NCHW', 'OIHW', 'NCHW'),
                                 preferred_element_type=jnp.float32)
    z = jnp.maximum(bn(h, g2, bta2, m2, v2), 0.0)
    out = lax.conv_general_dilated(z.astype(jnp.bfloat16), w2_pt.astype(jnp.bfloat16),
                                   (1, 1), ((1, 1), (1, 1)),
                                   dimension_numbers=('NCHW', 'OIHW', 'NCHW'),
                                   preferred_element_type=jnp.float32)
    return out


# --------------------------------------------------------------------------
if __name__ == "__main__":
    # Module hyper-parameters (small but structurally faithful).
    feat_per_input = 8               # channels of EACH of the two input feature maps
    growth_rate = 8
    bn_size = 4
    Cmid = bn_size * growth_rate     # 32
    N, H, W = 2, 16, 16

    key = jax.random.PRNGKey(0)
    keys = jax.random.split(key, 12)

    # Two un-concatenated DenseNet feature maps (the typical _DenseLayer input).
    x0 = jax.random.normal(keys[0], (N, feat_per_input, H, W), jnp.float32)
    x1 = jax.random.normal(keys[11], (N, feat_per_input, H, W), jnp.float32)
    Cin = 2 * feat_per_input         # 16

    # Deterministic synthetic parameters (eval-mode BN running stats).
    g1 = jax.random.uniform(keys[1], (Cin,), jnp.float32, 0.5, 1.5)
    bta1 = jax.random.normal(keys[2], (Cin,), jnp.float32) * 0.1
    m1 = jax.random.normal(keys[3], (Cin,), jnp.float32) * 0.1
    v1 = jax.random.uniform(keys[4], (Cin,), jnp.float32, 0.5, 1.5)
    w1_pt = jax.random.normal(keys[5], (Cmid, Cin, 1, 1), jnp.float32) * 0.1

    g2 = jax.random.uniform(keys[6], (Cmid,), jnp.float32, 0.5, 1.5)
    bta2 = jax.random.normal(keys[7], (Cmid,), jnp.float32) * 0.1
    m2 = jax.random.normal(keys[8], (Cmid,), jnp.float32) * 0.1
    v2 = jax.random.uniform(keys[9], (Cmid,), jnp.float32, 0.5, 1.5)
    w2_pt = jax.random.normal(keys[10], (growth_rate, Cmid, 3, 3), jnp.float32) * 0.1

    params = (g1, bta1, m1, v1, w1_pt, g2, bta2, m2, v2, w2_pt)

    # tile_h=8 -> 2 spatial tiles per image, so the 3x3 halo-exchange path is exercised.
    out = dense_layer_forward([x0, x1], params, drop_rate=0.0, tile_h=8)
    out = jax.block_until_ready(out)

    ref = jax.block_until_ready(
        reference_forward(jnp.concatenate([x0, x1], axis=1), params))

    assert out.shape == (N, growth_rate, H, W), out.shape
    # bf16 MXU operands with f32 accumulation (mirrored in the reference).
    np.testing.assert_allclose(np.asarray(out), np.asarray(ref), rtol=5e-3, atol=5e-3)

    print("KERNEL_OK")
</pallas_src>

<mosaic_0001>
module attributes {stable_mosaic.version = 11 : i64} {
  func.func @kernel(%arg0: i32, %arg1: i32, %arg2: memref<1x8x16x16xf32, #tpu.memory_space<vmem>>, %arg3: memref<1x1x32x16xf32, #tpu.memory_space<vmem>>, %arg4: memref<1x16xf32, #tpu.memory_space<vmem>>, %arg5: memref<1x16xf32, #tpu.memory_space<vmem>>, %arg6: memref<16x128xbf16, #tpu.memory_space<vmem>>, %arg7: memref<1x128xf32, #tpu.memory_space<vmem>>, %arg8: memref<1x128xf32, #tpu.memory_space<vmem>>, %arg9: memref<9x128x128xbf16, #tpu.memory_space<vmem>>, %arg10: memref<1x1x128x8xf32, #tpu.memory_space<vmem>>, %arg11: memref<10x18x128xf32, #tpu.memory_space<vmem>>, %arg12: memref<128x128xf32, #tpu.memory_space<vmem>>) attributes {dimension_semantics = [#tpu.dimension_semantics<parallel>, #tpu.dimension_semantics<parallel>], iteration_bounds = array<i64: 2, 2>, scalar_prefetch = 0 : i64, scratch_operands = 2 : i64, tpu.core_type = #tpu.core_type<tc>, window_params = [{transform_indices = @transform_0, window_bounds = array<i64: 1, 8, 16, 16>}, {transform_indices = @transform_1, window_bounds = array<i64: 1, 1, 32, 16>}, {pipeline_mode = #tpu.pipeline_mode<synchronous>, transform_indices = @transform_2, window_bounds = array<i64: 1, 16>}, {pipeline_mode = #tpu.pipeline_mode<synchronous>, transform_indices = @transform_3, window_bounds = array<i64: 1, 16>}, {pipeline_mode = #tpu.pipeline_mode<synchronous>, transform_indices = @transform_4, window_bounds = array<i64: 16, 128>}, {pipeline_mode = #tpu.pipeline_mode<synchronous>, transform_indices = @transform_5, window_bounds = array<i64: 1, 128>}, {pipeline_mode = #tpu.pipeline_mode<synchronous>, transform_indices = @transform_6, window_bounds = array<i64: 1, 128>}, {pipeline_mode = #tpu.pipeline_mode<synchronous>, transform_indices = @transform_7, window_bounds = array<i64: 9, 128, 128>}, {transform_indices = @transform_8, window_bounds = array<i64: 1, 1, 128, 8>}]} {
    %c0 = arith.constant 0 : index
    %c0_0 = arith.constant 0 : index
    %0 = vector.load %arg4[%c0, %c0_0] : memref<1x16xf32, #tpu.memory_space<vmem>>, vector<1x16xf32>
    %c0_1 = arith.constant 0 : index
    %c0_2 = arith.constant 0 : index
    %1 = vector.load %arg5[%c0_1, %c0_2] : memref<1x16xf32, #tpu.memory_space<vmem>>, vector<1x16xf32>
    %c0_3 = arith.constant 0 : index
    %c0_4 = arith.constant 0 : index
    %2 = vector.load %arg7[%c0_3, %c0_4] : memref<1x128xf32, #tpu.memory_space<vmem>>, vector<1x128xf32>
    %c0_5 = arith.constant 0 : index
    %c0_6 = arith.constant 0 : index
    %3 = vector.load %arg8[%c0_5, %c0_6] : memref<1x128xf32, #tpu.memory_space<vmem>>, vector<1x128xf32>
    %c0_7 = arith.constant 0 : index
    %c0_8 = arith.constant 0 : index
    %4 = vector.load %arg6[%c0_7, %c0_8] : memref<16x128xbf16, #tpu.memory_space<vmem>>, vector<16x128xbf16>
    %c0_9 = arith.constant 0 : index
    %c0_10 = arith.constant 0 : index
    %c0_11 = arith.constant 0 : index
    %c0_12 = arith.constant 0 : index
    %5 = vector.load %arg2[%c0_9, %c0_10, %c0_11, %c0_12] : memref<1x8x16x16xf32, #tpu.memory_space<vmem>>, vector<1x8x16x16xf32>
    %6 = vector.shape_cast %5 : vector<1x8x16x16xf32> to vector<128x16xf32>
    %7 = vector.broadcast %0 : vector<1x16xf32> to vector<128x16xf32>
    %8 = arith.mulf %6, %7 : vector<128x16xf32>
    %9 = vector.broadcast %1 : vector<1x16xf32> to vector<128x16xf32>
    %10 = arith.addf %8, %9 : vector<128x16xf32>
    %cst = arith.constant 0.000000e+00 : f32
    %11 = vector.broadcast %cst : f32 to vector<128x16xf32>
    %12 = arith.maximumf %10, %11 : vector<128x16xf32>
    %13 = arith.truncf %12 : vector<128x16xf32> to vector<128x16xbf16>
    %cst_13 = arith.constant dense<0.000000e+00> : vector<128x128xf32>
    %14 = tpu.matmul %13, %4, %cst_13 {dimension_numbers = #tpu.dot_dimension_numbers<[1], [0], [0], [1], [0, 0, 1, 1], [], []>} : vector<128x16xbf16>, vector<16x128xbf16>, vector<128x128xf32> -> vector<128x128xf32>
    %15 = vector.broadcast %2 : vector<1x128xf32> to vector<128x128xf32>
    %16 = arith.mulf %14, %15 : vector<128x128xf32>
    %17 = vector.broadcast %3 : vector<1x128xf32> to vector<128x128xf32>
    %18 = arith.addf %16, %17 : vector<128x128xf32>
    %cst_14 = arith.constant 0.000000e+00 : f32
    %19 = vector.broadcast %cst_14 : f32 to vector<128x128xf32>
    %20 = arith.maximumf %18, %19 : vector<128x128xf32>
    %c0_15 = arith.constant 0 : index
    %c0_16 = arith.constant 0 : index
    %c0_17 = arith.constant 0 : index
    %c0_18 = arith.constant 0 : index
    %21 = vector.load %arg3[%c0_15, %c0_16, %c0_17, %c0_18] : memref<1x1x32x16xf32, #tpu.memory_space<vmem>>, vector<1x1x32x16xf32>
    %22 = vector.shape_cast %21 : vector<1x1x32x16xf32> to vector<32x16xf32>
    %23 = vector.broadcast %0 : vector<1x16xf32> to vector<32x16xf32>
    %24 = arith.mulf %22, %23 : vector<32x16xf32>
    %25 = vector.broadcast %1 : vector<1x16xf32> to vector<32x16xf32>
    %26 = arith.addf %24, %25 : vector<32x16xf32>
    %cst_19 = arith.constant 0.000000e+00 : f32
    %27 = vector.broadcast %cst_19 : f32 to vector<32x16xf32>
    %28 = arith.maximumf %26, %27 : vector<32x16xf32>
    %29 = arith.truncf %28 : vector<32x16xf32> to vector<32x16xbf16>
    %cst_20 = arith.constant dense<0.000000e+00> : vector<32x128xf32>
    %30 = tpu.matmul %29, %4, %cst_20 {dimension_numbers = #tpu.dot_dimension_numbers<[1], [0], [0], [1], [0, 0, 1, 1], [], []>} : vector<32x16xbf16>, vector<16x128xbf16>, vector<32x128xf32> -> vector<32x128xf32>
    %31 = vector.broadcast %2 : vector<1x128xf32> to vector<32x128xf32>
    %32 = arith.mulf %30, %31 : vector<32x128xf32>
    %33 = vector.broadcast %3 : vector<1x128xf32> to vector<32x128xf32>
    %34 = arith.addf %32, %33 : vector<32x128xf32>
    %cst_21 = arith.constant 0.000000e+00 : f32
    %35 = vector.broadcast %cst_21 : f32 to vector<32x128xf32>
    %36 = arith.maximumf %34, %35 : vector<32x128xf32>
    %c0_i32 = arith.constant 0 : i32
    %37 = arith.cmpi sgt, %arg1, %c0_i32 : i32
    %38 = arith.extui %37 : i1 to i32
    %39 = arith.sitofp %38 : i32 to f32
    %c1_i32 = arith.constant 1 : i32
    %40 = arith.cmpi slt, %arg1, %c1_i32 : i32
    %41 = arith.extui %40 : i1 to i32
    %42 = arith.sitofp %41 : i32 to f32
    %43 = vector.extract_strided_slice %36 {offsets = [0, 0], sizes = [16, 128], strides = [1, 1]} : vector<32x128xf32> to vector<16x128xf32>
    %44 = vector.broadcast %39 : f32 to vector<16x128xf32>
    %45 = arith.mulf %43, %44 : vector<16x128xf32>
    %46 = vector.extract_strided_slice %36 {offsets = [16, 0], sizes = [16, 128], strides = [1, 1]} : vector<32x128xf32> to vector<16x128xf32>
    %47 = vector.broadcast %42 : f32 to vector<16x128xf32>
    %48 = arith.mulf %46, %47 : vector<16x128xf32>
    %cst_22 = arith.constant 0.000000e+00 : f32
    %49 = vector.broadcast %cst_22 : f32 to vector<1x1x128xf32>
    %cst_23 = arith.constant 0.000000e+00 : f32
    %50 = vector.broadcast %cst_23 : f32 to vector<8x1x128xf32>
    %51 = vector.shape_cast %45 : vector<16x128xf32> to vector<1x16x128xf32>
    %52 = tpu.concatenate %49, %51, %49 in 1 : vector<1x1x128xf32>, vector<1x16x128xf32>, vector<1x1x128xf32> -> vector<1x18x128xf32>
    %c0_24 = arith.constant 0 : index
    %c0_25 = arith.constant 0 : index
    %c0_26 = arith.constant 0 : index
    %53 = vector.load %arg11[%c0_24, %c0_25, %c0_26] : memref<10x18x128xf32, #tpu.memory_space<vmem>>, vector<1x18x128xf32>
    tpu.vector_store %arg11[%c0_24, %c0_25, %c0_26], %52 {strides = array<i32>} : memref<10x18x128xf32, #tpu.memory_space<vmem>>, vector<1x18x128xf32>,
    %54 = vector.shape_cast %48 : vector<16x128xf32> to vector<1x16x128xf32>
    %55 = tpu.concatenate %49, %54, %49 in 1 : vector<1x1x128xf32>, vector<1x16x128xf32>, vector<1x1x128xf32> -> vector<1x18x128xf32>
    %c9 = arith.constant 9 : index
    %c0_27 = arith.constant 0 : index
    %c0_28 = arith.constant 0 : index
    %56 = vector.load %arg11[%c9, %c0_27, %c0_28] : memref<10x18x128xf32, #tpu.memory_space<vmem>>, vector<1x18x128xf32>
    tpu.vector_store %arg11[%c9, %c0_27, %c0_28], %55 {strides = array<i32>} : memref<10x18x128xf32, #tpu.memory_space<vmem>>, vector<1x18x128xf32>,
    %57 = vector.shape_cast %20 : vector<128x128xf32> to vector<8x16x128xf32>
    %58 = tpu.concatenate %50, %57, %50 in 1 : vector<8x1x128xf32>, vector<8x16x128xf32>, vector<8x1x128xf32> -> vector<8x18x128xf32>
    %c1 = arith.constant 1 : index
    %c0_29 = arith.constant 0 : index
    %c0_30 = arith.constant 0 : index
    %59 = vector.load %arg11[%c1, %c0_29, %c0_30] : memref<10x18x128xf32, #tpu.memory_space<vmem>>, vector<8x18x128xf32>
    tpu.vector_store %arg11[%c1, %c0_29, %c0_30], %58 {strides = array<i32>} : memref<10x18x128xf32, #tpu.memory_space<vmem>>, vector<8x18x128xf32>,
    %c0_31 = arith.constant 0 : index
    %c0_32 = arith.constant 0 : index
    %c0_33 = arith.constant 0 : index
    %60 = vector.load %arg11[%c0_31, %c0_32, %c0_33] : memref<10x18x128xf32, #tpu.memory_space<vmem>>, vector<8x16x128xf32>
    %61 = vector.shape_cast %60 : vector<8x16x128xf32> to vector<128x128xf32>
    %62 = arith.truncf %61 : vector<128x128xf32> to vector<128x128xbf16>
    %c0_34 = arith.constant 0 : index
    %c0_35 = arith.constant 0 : index
    %c0_36 = arith.constant 0 : index
    %63 = vector.load %arg9[%c0_34, %c0_35, %c0_36] : memref<9x128x128xbf16, #tpu.memory_space<vmem>>, vector<1x128x128xbf16>
    %64 = vector.shape_cast %63 : vector<1x128x128xbf16> to vector<128x128xbf16>
    %cst_37 = arith.constant dense<0.000000e+00> : vector<128x128xf32>
    %65 = tpu.matmul %62, %64, %cst_37 {dimension_numbers = #tpu.dot_dimension_numbers<[1], [0], [0], [1], [0, 0, 1, 1], [], []>} : vector<128x128xbf16>, vector<128x128xbf16>, vector<128x128xf32> -> vector<128x128xf32>
    %c0_38 = arith.constant 0 : index
    %c0_39 = arith.constant 0 : index
    %66 = vector.load %arg12[%c0_38, %c0_39] : memref<128x128xf32, #tpu.memory_space<vmem>>, vector<128x128xf32>
    tpu.vector_store %arg12[%c0_38, %c0_39], %65 {strides = array<i32>} : memref<128x128xf32, #tpu.memory_space<vmem>>, vector<128x128xf32>,
    %c0_40 = arith.constant 0 : index
    %c1_41 = arith.constant 1 : index
    %c0_42 = arith.constant 0 : index
    %67 = vector.load %arg11[%c0_40, %c1_41, %c0_42] : memref<10x18x128xf32, #tpu.memory_space<vmem>>, vector<8x16x128xf32>
    %68 = vector.shape_cast %67 : vector<8x16x128xf32> to vector<128x128xf32>
    %69 = arith.truncf %68 : vector<128x128xf32> to vector<128x128xbf16>
    %c1_43 = arith.constant 1 : index
    %c0_44 = arith.constant 0 : index
    %c0_45 = arith.constant 0 : index
    %70 = vector.load %arg9[%c1_43, %c0_44, %c0_45] : memref<9x128x128xbf16, #tpu.memory_space<vmem>>, vector<1x128x128xbf16>
    %71 = vector.shape_cast %70 : vector<1x128x128xbf16> to vector<128x128xbf16>
    %cst_46 = arith.constant dense<0.000000e+00> : vector<128x128xf32>
    %72 = tpu.matmul %69, %71, %cst_46 {dimension_numbers = #tpu.dot_dimension_numbers<[1], [0], [0], [1], [0, 0, 1, 1], [], []>} : vector<128x128xbf16>, vector<128x128xbf16>, vector<128x128xf32> -> vector<128x128xf32>
    %c0_47 = arith.constant 0 : index
    %c0_48 = arith.constant 0 : index
    %73 = vector.load %arg12[%c0_47, %c0_48] : memref<128x128xf32, #tpu.memory_space<vmem>>, vector<128x128xf32>
    %74 = arith.addf %73, %72 : vector<128x128xf32>
    %c0_49 = arith.constant 0 : index
    %c0_50 = arith.constant 0 : index
    %75 = vector.load %arg12[%c0_49, %c0_50] : memref<128x128xf32, #tpu.memory_space<vmem>>, vector<128x128xf32>
    tpu.vector_store %arg12[%c0_49, %c0_50], %74 {strides = array<i32>} : memref<128x128xf32, #tpu.memory_space<vmem>>, vector<128x128xf32>,
    %c0_51 = arith.constant 0 : index
    %c2 = arith.constant 2 : index
    %c0_52 = arith.constant 0 : index
    %76 = vector.load %arg11[%c0_51, %c2, %c0_52] : memref<10x18x128xf32, #tpu.memory_space<vmem>>, vector<8x16x128xf32>
    %77 = vector.shape_cast %76 : vector<8x16x128xf32> to vector<128x128xf32>
    %78 = arith.truncf %77 : vector<128x128xf32> to vector<128x128xbf16>
    %c2_53 = arith.constant 2 : index
    %c0_54 = arith.constant 0 : index
    %c0_55 = arith.constant 0 : index
    %79 = vector.load %arg9[%c2_53, %c0_54, %c0_55] : memref<9x128x128xbf16, #tpu.memory_space<vmem>>, vector<1x128x128xbf16>
    %80 = vector.shape_cast %79 : vector<1x128x128xbf16> to vector<128x128xbf16>
    %cst_56 = arith.constant dense<0.000000e+00> : vector<128x128xf32>
    %81 = tpu.matmul %78, %80, %cst_56 {dimension_numbers = #tpu.dot_dimension_numbers<[1], [0], [0], [1], [0, 0, 1, 1], [], []>} : vector<128x128xbf16>, vector<128x128xbf16>, vector<128x128xf32> -> vector<128x128xf32>
    %c0_57 = arith.constant 0 : index
    %c0_58 = arith.constant 0 : index
    %82 = vector.load %arg12[%c0_57, %c0_58] : memref<128x128xf32, #tpu.memory_space<vmem>>, vector<128x128xf32>
    %83 = arith.addf %82, %81 : vector<128x128xf32>
    %c0_59 = arith.constant 0 : index
    %c0_60 = arith.constant 0 : index
    %84 = vector.load %arg12[%c0_59, %c0_60] : memref<128x128xf32, #tpu.memory_space<vmem>>, vector<128x128xf32>
    tpu.vector_store %arg12[%c0_59, %c0_60], %83 {strides = array<i32>} : memref<128x128xf32, #tpu.memory_space<vmem>>, vector<128x128xf32>,
    %c1_61 = arith.constant 1 : index
    %c0_62 = arith.constant 0 : index
    %c0_63 = arith.constant 0 : index
    %85 = vector.load %arg11[%c1_61, %c0_62, %c0_63] : memref<10x18x128xf32, #tpu.memory_space<vmem>>, vector<8x16x128xf32>
    %86 = vector.shape_cast %85 : vector<8x16x128xf32> to vector<128x128xf32>
    %87 = arith.truncf %86 : vector<128x128xf32> to vector<128x128xbf16>
    %c3 = arith.constant 3 : index
    %c0_64 = arith.constant 0 : index
    %c0_65 = arith.constant 0 : index
    %88 = vector.load %arg9[%c3, %c0_64, %c0_65] : memref<9x128x128xbf16, #tpu.memory_space<vmem>>, vector<1x128x128xbf16>
    %89 = vector.shape_cast %88 : vector<1x128x128xbf16> to vector<128x128xbf16>
    %cst_66 = arith.constant dense<0.000000e+00> : vector<128x128xf32>
    %90 = tpu.matmul %87, %89, %cst_66 {dimension_numbers = #tpu.dot_dimension_numbers<[1], [0], [0], [1], [0, 0, 1, 1], [], []>} : vector<128x128xbf16>, vector<128x128xbf16>, vector<128x128xf32> -> vector<128x128xf32>
    %c0_67 = arith.constant 0 : index
    %c0_68 = arith.constant 0 : index
    %91 = vector.load %arg12[%c0_67, %c0_68] : memref<128x128xf32, #tpu.memory_space<vmem>>, vector<128x128xf32>
    %92 = arith.addf %91, %90 : vector<128x128xf32>
    %c0_69 = arith.constant 0 : index
    %c0_70 = arith.constant 0 : index
    %93 = vector.load %arg12[%c0_69, %c0_70] : memref<128x128xf32, #tpu.memory_space<vmem>>, vector<128x128xf32>
    tpu.vector_store %arg12[%c0_69, %c0_70], %92 {strides = array<i32>} : memref<128x128xf32, #tpu.memory_space<vmem>>, vector<128x128xf32>,
    %c1_71 = arith.constant 1 : index
    %c1_72 = arith.constant 1 : index
    %c0_73 = arith.constant 0 : index
    %94 = vector.load %arg11[%c1_71, %c1_72, %c0_73] : memref<10x18x128xf32, #tpu.memory_space<vmem>>, vector<8x16x128xf32>
    %95 = vector.shape_cast %94 : vector<8x16x128xf32> to vector<128x128xf32>
    %96 = arith.truncf %95 : vector<128x128xf32> to vector<128x128xbf16>
    %c4 = arith.constant 4 : index
    %c0_74 = arith.constant 0 : index
    %c0_75 = arith.constant 0 : index
    %97 = vector.load %arg9[%c4, %c0_74, %c0_75] : memref<9x128x128xbf16, #tpu.memory_space<vmem>>, vector<1x128x128xbf16>
    %98 = vector.shape_cast %97 : vector<1x128x128xbf16> to vector<128x128xbf16>
    %cst_76 = arith.constant dense<0.000000e+00> : vector<128x128xf32>
    %99 = tpu.matmul %96, %98, %cst_76 {dimension_numbers = #tpu.dot_dimension_numbers<[1], [0], [0], [1], [0, 0, 1, 1], [], []>} : vector<128x128xbf16>, vector<128x128xbf16>, vector<128x128xf32> -> vector<128x128xf32>
    %c0_77 = arith.constant 0 : index
    %c0_78 = arith.constant 0 : index
    %100 = vector.load %arg12[%c0_77, %c0_78] : memref<128x128xf32, #tpu.memory_space<vmem>>, vector<128x128xf32>
    %101 = arith.addf %100, %99 : vector<128x128xf32>
    %c0_79 = arith.constant 0 : index
    %c0_80 = arith.constant 0 : index
    %102 = vector.load %arg12[%c0_79, %c0_80] : memref<128x128xf32, #tpu.memory_space<vmem>>, vector<128x128xf32>
    tpu.vector_store %arg12[%c0_79, %c0_80], %101 {strides = array<i32>} : memref<128x128xf32, #tpu.memory_space<vmem>>, vector<128x128xf32>,
    %c1_81 = arith.constant 1 : index
    %c2_82 = arith.constant 2 : index
    %c0_83 = arith.constant 0 : index
    %103 = vector.load %arg11[%c1_81, %c2_82, %c0_83] : memref<10x18x128xf32, #tpu.memory_space<vmem>>, vector<8x16x128xf32>
    %104 = vector.shape_cast %103 : vector<8x16x128xf32> to vector<128x128xf32>
    %105 = arith.truncf %104 : vector<128x128xf32> to vector<128x128xbf16>
    %c5 = arith.constant 5 : index
    %c0_84 = arith.constant 0 : index
    %c0_85 = arith.constant 0 : index
    %106 = vector.load %arg9[%c5, %c0_84, %c0_85] : memref<9x128x128xbf16, #tpu.memory_space<vmem>>, vector<1x128x128xbf16>
    %107 = vector.shape_cast %106 : vector<1x128x128xbf16> to vector<128x128xbf16>
    %cst_86 = arith.constant dense<0.000000e+00> : vector<128x128xf32>
    %108 = tpu.matmul %105, %107, %cst_86 {dimension_numbers = #tpu.dot_dimension_numbers<[1], [0], [0], [1], [0, 0, 1, 1], [], []>} : vector<128x128xbf16>, vector<128x128xbf16>, vector<128x128xf32> -> vector<128x128xf32>
    %c0_87 = arith.constant 0 : index
    %c0_88 = arith.constant 0 : index
    %109 = vector.load %arg12[%c0_87, %c0_88] : memref<128x128xf32, #tpu.memory_space<vmem>>, vector<128x128xf32>
    %110 = arith.addf %109, %108 : vector<128x128xf32>
    %c0_89 = arith.constant 0 : index
    %c0_90 = arith.constant 0 : index
    %111 = vector.load %arg12[%c0_89, %c0_90] : memref<128x128xf32, #tpu.memory_space<vmem>>, vector<128x128xf32>
    tpu.vector_store %arg12[%c0_89, %c0_90], %110 {strides = array<i32>} : memref<128x128xf32, #tpu.memory_space<vmem>>, vector<128x128xf32>,
    %c2_91 = arith.constant 2 : index
    %c0_92 = arith.constant 0 : index
    %c0_93 = arith.constant 0 : index
    %112 = vector.load %arg11[%c2_91, %c0_92, %c0_93] : memref<10x18x128xf32, #tpu.memory_space<vmem>>, vector<8x16x128xf32>
    %113 = vector.shape_cast %112 : vector<8x16x128xf32> to vector<128x128xf32>
    %114 = arith.truncf %113 : vector<128x128xf32> to vector<128x128xbf16>
    %c6 = arith.constant 6 : index
    %c0_94 = arith.constant 0 : index
    %c0_95 = arith.constant 0 : index
    %115 = vector.load %arg9[%c6, %c0_94, %c0_95] : memref<9x128x128xbf16, #tpu.memory_space<vmem>>, vector<1x128x128xbf16>
    %116 = vector.shape_cast %115 : vector<1x128x128xbf16> to vector<128x128xbf16>
    %cst_96 = arith.constant dense<0.000000e+00> : vector<128x128xf32>
    %117 = tpu.matmul %114, %116, %cst_96 {dimension_numbers = #tpu.dot_dimension_numbers<[1], [0], [0], [1], [0, 0, 1, 1], [], []>} : vector<128x128xbf16>, vector<128x128xbf16>, vector<128x128xf32> -> vector<128x128xf32>
    %c0_97 = arith.constant 0 : index
    %c0_98 = arith.constant 0 : index
    %118 = vector.load %arg12[%c0_97, %c0_98] : memref<128x128xf32, #tpu.memory_space<vmem>>, vector<128x128xf32>
    %119 = arith.addf %118, %117 : vector<128x128xf32>
    %c0_99 = arith.constant 0 : index
    %c0_100 = arith.constant 0 : index
    %120 = vector.load %arg12[%c0_99, %c0_100] : memref<128x128xf32, #tpu.memory_space<vmem>>, vector<128x128xf32>
    tpu.vector_store %arg12[%c0_99, %c0_100], %119 {strides = array<i32>} : memref<128x128xf32, #tpu.memory_space<vmem>>, vector<128x128xf32>,
    %c2_101 = arith.constant 2 : index
    %c1_102 = arith.constant 1 : index
    %c0_103 = arith.constant 0 : index
    %121 = vector.load %arg11[%c2_101, %c1_102, %c0_103] : memref<10x18x128xf32, #tpu.memory_space<vmem>>, vector<8x16x128xf32>
    %122 = vector.shape_cast %121 : vector<8x16x128xf32> to vector<128x128xf32>
    %123 = arith.truncf %122 : vector<128x128xf32> to vector<128x128xbf16>
    %c7 = arith.constant 7 : index
    %c0_104 = arith.constant 0 : index
    %c0_105 = arith.constant 0 : index
    %124 = vector.load %arg9[%c7, %c0_104, %c0_105] : memref<9x128x128xbf16, #tpu.memory_space<vmem>>, vector<1x128x128xbf16>
    %125 = vector.shape_cast %124 : vector<1x128x128xbf16> to vector<128x128xbf16>
    %cst_106 = arith.constant dense<0.000000e+00> : vector<128x128xf32>
    %126 = tpu.matmul %123, %125, %cst_106 {dimension_numbers = #tpu.dot_dimension_numbers<[1], [0], [0], [1], [0, 0, 1, 1], [], []>} : vector<128x128xbf16>, vector<128x128xbf16>, vector<128x128xf32> -> vector<128x128xf32>
    %c0_107 = arith.constant 0 : index
    %c0_108 = arith.constant 0 : index
    %127 = vector.load %arg12[%c0_107, %c0_108] : memref<128x128xf32, #tpu.memory_space<vmem>>, vector<128x128xf32>
    %128 = arith.addf %127, %126 : vector<128x128xf32>
    %c0_109 = arith.constant 0 : index
    %c0_110 = arith.constant 0 : index
    %129 = vector.load %arg12[%c0_109, %c0_110] : memref<128x128xf32, #tpu.memory_space<vmem>>, vector<128x128xf32>
    tpu.vector_store %arg12[%c0_109, %c0_110], %128 {strides = array<i32>} : memref<128x128xf32, #tpu.memory_space<vmem>>, vector<128x128xf32>,
    %c2_111 = arith.constant 2 : index
    %c2_112 = arith.constant 2 : index
    %c0_113 = arith.constant 0 : index
    %130 = vector.load %arg11[%c2_111, %c2_112, %c0_113] : memref<10x18x128xf32, #tpu.memory_space<vmem>>, vector<8x16x128xf32>
    %131 = vector.shape_cast %130 : vector<8x16x128xf32> to vector<128x128xf32>
    %132 = arith.truncf %131 : vector<128x128xf32> to vector<128x128xbf16>
    %c8 = arith.constant 8 : index
    %c0_114 = arith.constant 0 : index
    %c0_115 = arith.constant 0 : index
    %133 = vector.load %arg9[%c8, %c0_114, %c0_115] : memref<9x128x128xbf16, #tpu.memory_space<vmem>>, vector<1x128x128xbf16>
    %134 = vector.shape_cast %133 : vector<1x128x128xbf16> to vector<128x128xbf16>
    %cst_116 = arith.constant dense<0.000000e+00> : vector<128x128xf32>
    %135 = tpu.matmul %132, %134, %cst_116 {dimension_numbers = #tpu.dot_dimension_numbers<[1], [0], [0], [1], [0, 0, 1, 1], [], []>} : vector<128x128xbf16>, vector<128x128xbf16>, vector<128x128xf32> -> vector<128x128xf32>
    %c0_117 = arith.constant 0 : index
    %c0_118 = arith.constant 0 : index
    %136 = vector.load %arg12[%c0_117, %c0_118] : memref<128x128xf32, #tpu.memory_space<vmem>>, vector<128x128xf32>
    %137 = arith.addf %136, %135 : vector<128x128xf32>
    %c0_119 = arith.constant 0 : index
    %c0_120 = arith.constant 0 : index
    %138 = vector.load %arg12[%c0_119, %c0_120] : memref<128x128xf32, #tpu.memory_space<vmem>>, vector<128x128xf32>
    tpu.vector_store %arg12[%c0_119, %c0_120], %137 {strides = array<i32>} : memref<128x128xf32, #tpu.memory_space<vmem>>, vector<128x128xf32>,
    %c0_121 = arith.constant 0 : index
    %c0_122 = arith.constant 0 : index
    %139 = vector.load %arg12[%c0_121, %c0_122] : memref<128x128xf32, #tpu.memory_space<vmem>>, vector<128x8xf32>
    %140 = vector.shape_cast %139 : vector<128x8xf32> to vector<1x1x128x8xf32>
    %c0_123 = arith.constant 0 : index
    %c0_124 = arith.constant 0 : index
    %c0_125 = arith.constant 0 : index
    %c0_126 = arith.constant 0 : index
    %141 = vector.load %arg10[%c0_123, %c0_124, %c0_125, %c0_126] : memref<1x1x128x8xf32, #tpu.memory_space<vmem>>, vector<1x1x128x8xf32>
    tpu.vector_store %arg10[%c0_123, %c0_124, %c0_125, %c0_126], %140 {strides = array<i32>} : memref<1x1x128x8xf32, #tpu.memory_space<vmem>>, vector<1x1x128x8xf32>,
    return
  }
  func.func @transform_0(%arg0: i32, %arg1: i32) -> (i32, i32, i32, i32) {
    %c0_i32 = arith.constant 0 : i32
    %c0_i32_0 = arith.constant 0 : i32
    %c0_i32_1 = arith.constant 0 : i32
    return %arg0, %arg1, %c0_i32, %c0_i32_0 : i32, i32, i32, i32
  }
  func.func @transform_1(%arg0: i32, %arg1: i32) -> (i32, i32, i32, i32) {
    %c0_i32 = arith.constant 0 : i32
    %c0_i32_0 = arith.constant 0 : i32
    %c0_i32_1 = arith.constant 0 : i32
    return %arg0, %arg1, %c0_i32, %c0_i32_0 : i32, i32, i32, i32
  }
  func.func @transform_2(%arg0: i32, %arg1: i32) -> (i32, i32) {
    %c0_i32 = arith.constant 0 : i32
    %c0_i32_0 = arith.constant 0 : i32
    %c0_i32_1 = arith.constant 0 : i32
    return %c0_i32, %c0_i32_0 : i32, i32
  }
  func.func @transform_3(%arg0: i32, %arg1: i32) -> (i32, i32) {
    %c0_i32 = arith.constant 0 : i32
    %c0_i32_0 = arith.constant 0 : i32
    %c0_i32_1 = arith.constant 0 : i32
    return %c0_i32, %c0_i32_0 : i32, i32
  }
  func.func @transform_4(%arg0: i32, %arg1: i32) -> (i32, i32) {
    %c0_i32 = arith.constant 0 : i32
    %c0_i32_0 = arith.constant 0 : i32
    %c0_i32_1 = arith.constant 0 : i32
    return %c0_i32, %c0_i32_0 : i32, i32
  }
  func.func @transform_5(%arg0: i32, %arg1: i32) -> (i32, i32) {
    %c0_i32 = arith.constant 0 : i32
    %c0_i32_0 = arith.constant 0 : i32
    %c0_i32_1 = arith.constant 0 : i32
    return %c0_i32, %c0_i32_0 : i32, i32
  }
  func.func @transform_6(%arg0: i32, %arg1: i32) -> (i32, i32) {
    %c0_i32 = arith.constant 0 : i32
    %c0_i32_0 = arith.constant 0 : i32
    %c0_i32_1 = arith.constant 0 : i32
    return %c0_i32, %c0_i32_0 : i32, i32
  }
  func.func @transform_7(%arg0: i32, %arg1: i32) -> (i32, i32, i32) {
    %c0_i32 = arith.constant 0 : i32
    %c0_i32_0 = arith.constant 0 : i32
    %c0_i32_1 = arith.constant 0 : i32
    %c0_i32_2 = arith.constant 0 : i32
    return %c0_i32, %c0_i32_0, %c0_i32_1 : i32, i32, i32
  }
  func.func @transform_8(%arg0: i32, %arg1: i32) -> (i32, i32, i32, i32) {
    %c0_i32 = arith.constant 0 : i32
    %c0_i32_0 = arith.constant 0 : i32
    %c0_i32_1 = arith.constant 0 : i32
    return %arg0, %arg1, %c0_i32, %c0_i32_0 : i32, i32, i32, i32
  }
}

</mosaic_0001>

<bundles_post_ra>
// kernel: tpu_custom_call.1
= control target key start
LH: loop header
LB: loop body
LE: loop exit
PB: predicated region body
PF: predicated region fallthrough
CT: control target
= control target key end

     0   :  { %s4868_s0 = inlined_call_operand.hbm [shape: f32[2,16,16,16], index: 0, kind: input, shape index: {}]   ;;  %s4869_s1 = inlined_call_operand.vmem [shape: f32[2,2,32,16], index: 1, kind: input, shape index: {}]   ;;  %s4870_s2 = inlined_call_operand.vmem [shape: f32[1,16], index: 2, kind: input, shape index: {}]   ;;  %s4871_s3 = inlined_call_operand.vmem [shape: f32[1,16], index: 3, kind: input, shape index: {}]   ;;  %s4872_s4 = inlined_call_operand.vmem [shape: bf16[16,128], index: 4, kind: input, shape index: {}]   ;;  %s4873_s5 = inlined_call_operand.vmem [shape: f32[1,128], index: 5, kind: input, shape index: {}]   ;;  %s4874_s6 = inlined_call_operand.vmem [shape: f32[1,128], index: 6, kind: input, shape index: {}]   ;;  %s4875_s7 = inlined_call_operand.hbm [shape: bf16[9,128,128], index: 7, kind: input, shape index: {}]   ;;  %s4876_s8 = inlined_call_operand.vmem [shape: f32[2,2,128,8], index: 8, kind: output, shape index: {}]  }
   0x1   :  { %4882 = sst [smem:[#allocation11_spill]] %s4869_s1 }
   0x2   :  { %4883 = sst [smem:[#allocation12_spill]] %s4871_s3 }
   0x3   :  { %4884 = sst [smem:[#allocation13_spill]] %s4873_s5 }
   0x4   :  { %4885 = sst [smem:[#allocation14_spill]] %s4874_s6 }
   0x5   :  { %4886 = sst [smem:[#allocation15_spill]] %s4875_s7 }
   0x6   :  { %4887 = sst [smem:[#allocation16_spill]] %s4876_s8 }
   0x7   :  { %13 = vsyncpa [#allocation5], 0 }
   0x8   :  { %15 = vsyncpa [#allocation5 + $0x1], 0 }
   0x9   :  { %16 = vsyncpa [#allocation7], 0  ;;  %s4273_s27 = smov 0   ;;  %s4275_s28 = smov 0  }
   0xa   :  { %s4277_s29 = smov 0   ;;  %s4279_s30 = smov 0  }
   0xb   :  { %s4281_s9 = smov 0   ;;  %s4283_s10 = smov 0  }
   0xc   :  { %s4285_s11 = smov 0   ;;  %s4287_s12 = smov 0  }
   0xd LB: > { %s3151_s13 = sadd.s32 4294967295, %s4219_s12   ;;  %p56_p0 = scmp.ne.s32.totalorder %s4195_s28, %s4191_s27  ;;  %s4219_s12 = sphi %s4287_s12, %s22_s12   ;;  %s4215_s11 = sphi %s4285_s11, %s4913_s11   ;;  %s4211_s10 = sphi %s4283_s10, %s4912_s10   ;;  %s4207_s9 = sphi %s4281_s9, %s4911_s9   ;;  %s4203_s30 = sphi %s4279_s30, %s4910_s30   ;;  %s4199_s29 = sphi %s4277_s29, %s4909_s29   ;;  %s4195_s28 = sphi %s4275_s28, %s4908_s28   ;;  %s4191_s27 = sphi %s4273_s27, %s4907_s27  }
   0xe   : > { %p4313_p1 = scmp.eq.s32.totalorder %s3151_s13, 0  ;;  %p3153_p2 = scmp.ge.s32.totalorder %s4219_s12, 1 }
   0xf   : > { %p249_p3 = scmp.lt.s32.totalorder %s4219_s12, 5  ;;  %s4221_s17 = smov [#allocation6]  }
  0x10   : > { %s4888_s14 = scalar_select %p4313_p1, 1, 0 }
  0x11   : > { %p4321_p4 = por %p4313_p1, %p56_p0  ;;  %p4325_p5 = pnand %p3153_p2, %p249_p3 }
  0x12   : > { %s276_s18 = sshll.u32 %s4221_s17, 4  ;;  %s4892_s7 = sld [smem:[#allocation15_spill]]  ;;  %s277_s18 = int_to_ptr.vmem [resolvable:$true] %s276_s18 }
  0x13   : > { %s4889_s15 = scalar_select %p4321_p4, 1, 0 }
  0x14   : > { %s4890_s16 = scalar_select %p4325_p5, 1, 0 }
  0x15   : > { %p3878_p6 = pneg %p4325_p5 }
  0x17   : > { %p4333_p7 = pnand %p3878_p6, %p4313_p1 }
  0x18   : > { %s4091_s22 = scalar_lea.hbm %s4892_s7, 9216 }
  0x19   : > { %p4092_p8 = scmp.ne.s32.totalorder %s4892_s7, %s4091_s22  ;;  %p4093_p9 = pneg %p4333_p7 }
  0x1a   : > { %p4098_p12 = scmp.lt.u32.totalorder %s4091_s22, %s4892_s7 }
  0x1b   : > { %p4094_p10 = pnand %p4093_p9, %p4092_p8 }
  0x1d   : > { %p4095_p11 = pneg %p4094_p10 }
  0x1f   : > { %p4100_p13 = pnand %p4098_p12, %p4095_p11 }
  0x21   : > { %4103 = shalt.err (!%p4100_p13)
}
  0x22   : > { %s4104_s27 = scalar_lea.vmem %s277_s18, 9216  ;;  %p4112_p6 = scmp.lt.s32.totalorder %s277_s18, %s277_s18 }
  0x23   : > { %p4105_p0 = scmp.ne.s32.totalorder %s277_s18, %s4104_s27  ;;  %p4113_p1 = scmp.lt.s32.totalorder %s4104_s27, %s4104_s27 }
  0x25   : > { %p4107_p2 = pnand %p4105_p0, %p4093_p9  ;;  %p4114_p4 = por %p4113_p1, %p4112_p6 }
  0x27   : > { %p4108_p3 = pneg %p4107_p2 }
  0x29   : > { %p4115_p5 = pnand %p4114_p4, %p4108_p3 }
  0x2b   : > { %4118 = shalt.err (!%p4115_p5)
}
  0x2c   : > { %s4222_s13 = smov 64   ;;  %s4223_s17 = smov 4  }
  0x2d   : > { %3881 = dma.hbm_to_vmem [thread:$0]  (!%p4333_p7), %s4892_s7, 9216, %s277_s18, [#allocation7], %s4222_s13, %s4222_s13, %s4223_s17  }
  0x2e   : > { %s31_s22 = sadd.s32 1, %s4211_s10  ;;  %s34_s23 = sadd.s32 1, %s4215_s11 }
  0x2f   : > { %p32_p1 = scmp.ge.s32.totalorder %s31_s22, 2  ;;  %s43_s24 = sadd.s32 1, %s4199_s29 }
  0x30   : > { %p50_p4 = scmp.ne.s32.totalorder %s4199_s29, %s4195_s28  ;;  %p51_p5 = scmp.eq.s32.totalorder %s4219_s12, 0 }
  0x31   : > { %s4915_s22 = smov (%p32_p1, %s31_s22), 0  ;;  %s4917_s23 = smov (!%p32_p1, %s34_s23), %s4215_s11 }
  0x32   : > { %4893 = sst [smem:[#allocation10_spill]] %s4915_s22  ;;  %s39_s25 = ssub.s32 %s4211_s10, %s4915_s22 }
  0x33   : > { %p36_p8 = scmp.ge.s32.totalorder %s4917_s23, 2  ;;  %p3887_p9 = scmp.lt.s32.totalorder %s4219_s12, 4 }
  0x34   : > { %p4365_p10 = por %p51_p5, %p50_p4  ;;  %s290_s18 = sand.u32 1, %s4199_s29  }
  0x35   : > { %s4919_s23 = smov (%p36_p8, %s4917_s23), 0  ;;  %s3156_s26 = sshll.u32 %s290_s18, 7 }
  0x36   : > { %s38_s27 = ssub.s32 %s4215_s11, %s4919_s23  ;;  %s3259_s17 = sshll.u32 %s4211_s10, 4 }
  0x37   : > { %s40_s13 = sor.u32 %s39_s25, %s38_s27  ;;  %s3159_s20 = sshll.u32 %s4215_s11, 5 }
  0x38   : > { %p41_p7 = scmp.eq.s32.totalorder %s40_s13, 0  ;;  %s301_s21 = sadd.s32 %s3259_s17, %s3159_s20 }
  0x39   : > { %s294_s7 = scalar_lea.vmem [#allocation4], %s3156_s26  ;;  %s3160_s6 = sshll.u32 %s301_s21, 7 }
  0x3a   : > { %s304_s22 = sshll.u32 %s294_s7, 4  ;;  %s4384_s3 = scalar_lea.hbm %s4868_s0, %s3160_s6  ;;  %s4379_s22 = int_to_ptr.vmem [resolvable:$true] %s304_s22 }
  0x3b   : > { %s4377_s8 = scalar_select %p41_p7, %s4199_s29, %s43_s24  }
  0x3c   : > { %p4390_p11 = pnand %p3887_p9, %p4365_p10  ;;  %s4394_s7 = scalar_lea.sflag [#allocation5], %s290_s18 }
  0x3d   : > { %s4119_s24 = scalar_lea.hbm %s4384_s3, 2048  ;;  %s4124_s6 = scalar_lea.hbm %s4868_s0, 8192 }
  0x3e   : > { %p4120_p12 = scmp.ne.s32.totalorder %s4384_s3, %s4119_s24  ;;  %p4121_p13 = pneg %p4390_p11 }
  0x3f   : > { %p4125_p3 = scmp.lt.u32.totalorder %s4384_s3, %s4868_s0  ;;  %p4126_p6 = scmp.lt.u32.totalorder %s4124_s6, %s4119_s24 }
  0x40   : > { %p4122_p0 = pnand %p4121_p13, %p4120_p12  ;;  %p4128_p4 = scmp.lt.u32.totalorder %s4119_s24, %s4384_s3 }
  0x41   : > { %p4127_p1 = por %p4126_p6, %p4125_p3 }
  0x42   : > { %p4123_p2 = pneg %p4122_p0 }
  0x43   : > { %p4129_p5 = por %p4128_p4, %p4127_p1 }
  0x45   : > { %p4130_p8 = pnand %p4129_p5, %p4123_p2 }
  0x47   : > { %4133 = shalt.err (!%p4130_p8)
}
  0x48   : > { %s4134_s18 = scalar_lea.vmem %s4379_s22, 2048  ;;  %s4224_s27 = smov [#allocation4]  }
  0x49   : > { %p4135_p9 = scmp.ne.s32.totalorder %s4379_s22, %s4134_s18  ;;  %s4139_s13 = sshll.u32 %s4224_s27, 4  ;;  %s4140_s13 = int_to_ptr.vmem [resolvable:$false] %s4139_s13 }
  0x4a   : > { %s4141_s17 = scalar_lea.vmem %s4140_s13, 4096  ;;  %p4142_p12 = scmp.lt.s32.totalorder %s4379_s22, %s4140_s13 }
  0x4b   : > { %p4137_p10 = pnand %p4135_p9, %p4121_p13  ;;  %p4143_p0 = scmp.lt.s32.totalorder %s4141_s17, %s4134_s18 }
  0x4d   : > { %p4138_p7 = pneg %p4137_p10  ;;  %p4144_p3 = por %p4143_p0, %p4142_p12 }
  0x4f   : > { %p4145_p6 = pnand %p4144_p3, %p4138_p7 }
  0x51   : > { %4148 = shalt.err (!%p4145_p6)
}
  0x52   : > { %s4225_s20 = smov 128   ;;  %s4226_s21 = smov 8  }
  0x53   : > { %3885 = dma.hbm_to_vmem [thread:$0]  (!%p4390_p11), %s4384_s3, 2048, %s4379_s22, %s4394_s7, %s4225_s20, %s4225_s20, %s4226_s21  }
  0x54   : > { %p4896_p13 = scmp.ne.s32.totalorder %s4890_s16, 0 }
  0x55   : > { %s330_s24 = sand.u32 (!%p4896_p13), 1, %s4195_s28   ;;  %p4897_p2 = scmp.ne.s32.totalorder (!%p4896_p13), %s4889_s15, 0 }
  0x56   : > { %328 = sbr.rel (%p4896_p13) target bundleno = 706 (0x2c2), region = 52  ;;  %s3162_s1 = sshll.u32 (!%p4896_p13), %s330_s24, 7 }
  0x57   : > { %s331_s5 = scalar_lea.sflag (!%p4896_p13), [#allocation5], %s330_s24  ;;  %s4425_s6 = scalar_lea.vmem (!%p4896_p13), [#allocation4], %s3162_s1 }
  0x5d   : > { %4182 = dma.done.wait (%p4897_p2), %s331_s5, 2048  }
  0x5e   : > { %4184 = vsyncadd (%p4897_p2), %s331_s5, 4294965248  ;;  %p4898_p1 = scmp.ne.s32.totalorder %s4888_s14, 0 }
  0x60   : > { %4186 = dma.done.wait (%p4898_p1), [#allocation7], 9216  }
  0x61   : > { %4188 = vsyncadd (%p4898_p1), [#allocation7], 4294958080  ;;  %p385_p11 = scmp.lt.s32.totalorder %s4207_s9, 1  ;;  %p387_p4 = scmp.lt.s32.totalorder %s4203_s30, 1  ;;  %v3958_v0 = vld [vmem:[%s4872_s4] sm:$0xff]   ;;  %v410_v3 = vld [vmem:[%s4425_s6] sm:$0xff] }
  0x62   : > { %v4449_v1 = vld [vmem:[%s4870_s2] ss:$0 sm:$0xff]  ;;  %s4899_s21 = sld [smem:[#allocation12_spill]]  ;;  %s4900_s1 = sld [smem:[#allocation11_spill]]  ;;  %3416 = vmatprep.subr.bf16.mxu0 %v3958_v0  ;;  %3434 = vmatprep.subr.bf16.mxu1 %v3958_v0  ;;  %v411_v4 = vld [vmem:[%s4425_s6 + $0x8] sm:$0xff]  ;;  %v413_v7 = vld [vmem:[%s4425_s6 + $0x18] sm:$0xff] }
  0x63   : > { %s4921_s9 = smov (!%p385_p11, %s4207_s9), 1  ;;  %v432_v5 = vmul.f32 %v4449_v1, %v410_v3  ;;  %v412_v6 = vld [vmem:[%s4425_s6 + $0x10] sm:$0xff]  ;;  %3417 = vmatpush3.bf16.msra.mxu0 %v3958_v0  ;;  %3435 = vmatpush3.bf16.msra.mxu1 %v3958_v0  ;;  %v433_v8 = vmul.f32 %v4449_v1, %v411_v4  ;;  %vm500_vm0 = vcmask 130048   ;;  %v435_v10 = vmul.f32 %v4449_v1, %v413_v7  ;;  %v414_v23 = vld [vmem:[%s4425_s6 + $0x20] sm:$0xff]  ;;  %v415_v28 = vld [vmem:[%s4425_s6 + $0x28] sm:$0xff]  ;;  %p767_p5 = scmp.gt.s32.totalorder %s4203_s30, 0 }
  0x64   : > { %s388_s3 = scalar_select %p387_p4, %s4203_s30, 1  ;;  %v434_v9 = vmul.f32 %v4449_v1, %v412_v6  ;;  %v416_v29 = vld [vmem:[%s4425_s6 + $0x30] sm:$0xff]  ;;  %v417_v30 = vld [vmem:[%s4425_s6 + $0x38] sm:$0xff]  ;;  %v418_v35 = vld [vmem:[%s4425_s6 + $0x40] sm:$0xff]  ;;  %v436_v41 = vmul.f32 %v4449_v1, %v414_v23  ;;  %v437_v46 = vmul.f32 %v4449_v1, %v415_v28  ;;  %vm781_vm1 = vcmask 1040384  }
  0x65   : > { %s3165_s15 = sshll.u32 %s4921_s9, 3  ;;  %s3168_s16 = sshll.u32 %s4921_s9, 5  ;;  %v419_v36 = vld [vmem:[%s4425_s6 + $0x48] sm:$0xff]  ;;  %v420_v37 = vld [vmem:[%s4425_s6 + $0x50] sm:$0xff]  ;;  %v421_v42 = vld [vmem:[%s4425_s6 + $0x58] sm:$0xff]  ;;  %v438_v51 = vmul.f32 %v4449_v1, %v416_v29  ;;  %v439_v52 = vmul.f32 %v4449_v1, %v417_v30  ;;  %v440_v56 = vmul.f32 %v4449_v1, %v418_v35  ;;  %vm4227_vm3 = vmmov 1  }
  0x66   : > { %s3164_s22 = sshll.u32 %s388_s3, 2  ;;  %s3167_s25 = sshll.u32 %s388_s3, 4  ;;  %v422_v47 = vld [vmem:[%s4425_s6 + $0x60] sm:$0xff]  ;;  %v441_v57 = vmul.f32 %v4449_v1, %v419_v36  ;;  %v3961_v58 = vld [vmem:[#allocation6 + $0x108] sm:$0xff]   ;;  %v442_v62 = vmul.f32 %v4449_v1, %v420_v37  ;;  %v443_v6 = vmul.f32 %v4449_v1, %v421_v42  ;;  %v424_v7 = vld [vmem:[%s4425_s6 + $0x70] sm:$0xff]  ;;  %vm3002_vm5 = vcmask 64512  }
  0x67   : > { %s391_s14 = sadd.s32 %s3165_s15, %s3164_s22  ;;  %s4441_s7 = sadd.s32 %s3168_s16, %s3167_s25  ;;  %v3959_v48 = vld [vmem:[#allocation6 + $0x100] sm:$0xff]   ;;  %v423_v63 = vld [vmem:[%s4425_s6 + $0x68] sm:$0xff]  ;;  %v3963_v35 = vld [vmem:[#allocation6 + $0x110] sm:$0xff]  }
  0x68   : > { %s3166_s18 = sshll.u32 %s391_s14, 3  ;;  %v4454_v2 = vld [vmem:[%s4899_s21] ss:$0 sm:$0xff]  ;;  %v3960_v53 = vld [vmem:[#allocation6] sm:$0xff]   ;;  %v3962_v0 = vld [vmem:[#allocation6 + $0x8] sm:$0xff]   ;;  %3568 = vmatprep.subr.bf16.mxu0 %v3959_v48  ;;  %s4901_s22 = sld [smem:[#allocation13_spill]] }
  0x69   : > { %s393_s5 = scalar_lea.vmem %s4900_s1, %s3166_s18  ;;  %v454_v14 = vadd.f32 %v4454_v2, %v432_v5  ;;  %v455_v19 = vadd.f32 %v4454_v2, %v433_v8  ;;  %v456_v20 = vadd.f32 %v4454_v2, %v434_v9  ;;  %v457_v21 = vadd.f32 %v4454_v2, %v435_v10  ;;  %v425_v8 = vld [vmem:[%s4425_s6 + $0x78] sm:$0xff]  ;;  %3440 = vmatprep.subr.bf16.mxu1 %v3960_v53  ;;  %v3968_v37 = vld [vmem:[#allocation6 + $0x20] sm:$0xff]   ;;  %s4902_s18 = sld [smem:[#allocation14_spill]]  ;;  %vm4031_vm2 = vmneg %vm781_vm1 }
  0x6a   : > { %v682_v11 = vld [vmem:[%s393_s5] sm:$0xff]  ;;  %v683_v12 = vld [vmem:[%s393_s5 + $0x8] sm:$0xff]  ;;  %v684_v13 = vld [vmem:[%s393_s5 + $0x10] sm:$0xff]  ;;  %v458_v50 = vadd.f32 %v4454_v2, %v436_v41  ;;  %v459_v55 = vadd.f32 %v4454_v2, %v437_v46  ;;  %v460_v60 = vadd.f32 %v4454_v2, %v438_v51  ;;  %v461_v61 = vadd.f32 %v4454_v2, %v439_v52  ;;  %s768_s6 = scalar_select %p767_p5, 1, 0 }
  0x6b   : > { %v686_v15 = vmul.f32 %v4449_v1, %v682_v11  ;;  %v687_v16 = vmul.f32 %v4449_v1, %v683_v12  ;;  %v685_v17 = vld [vmem:[%s393_s5 + $0x18] sm:$0xff]  ;;  %v688_v18 = vmul.f32 %v4449_v1, %v684_v13  ;;  %v470_v24 = vmax.f32 %v454_v14, 0.0  ;;  %v3965_v36 = vld [vmem:[#allocation6 + $0x118] sm:$0xff]   ;;  %v4528_v46 = vld [vmem:[#allocation6 + $0x140] sm:$0xff]   ;;  %s771_s3 = scalar_select %p387_p4, 1, 0 }
  0x6c   : > { %v689_v22 = vmul.f32 %v4449_v1, %v685_v17  ;;  %v471_v31 = vmax.f32 %v455_v19, 0.0  ;;  %v472_v32 = vmax.f32 %v456_v20, 0.0  ;;  %v473_v33 = vmax.f32 %v457_v21, 0.0  ;;  %v3969_v41 = vld [vmem:[#allocation6 + $0x128] sm:$0xff]   ;;  %v3974_v42 = vld [vmem:[#allocation6 + $0x38] sm:$0xff]   ;;  %s769_s25 = scvt.s32.f32 %s768_s6  ;;  %vm4591_vm4 = vmpackc.low %vm4227_vm3, %vm4031_vm2  ;;  %s3169_s30 = sshll.u32 %s4441_s7, 3 }
  0x6d   : > { %v690_v25 = vadd.f32 %v4454_v2, %v686_v15  ;;  %v691_v26 = vadd.f32 %v4454_v2, %v687_v16  ;;  %v692_v27 = vadd.f32 %v4454_v2, %v688_v18  ;;  %v474_v59 = vmax.f32 %v458_v50, 0.0  ;;  %s772_s14 = scvt.s32.f32 %s771_s3  ;;  %s4905_s17 = sld [smem:[#allocation16_spill]] }
  0x6e   : > { %v693_v34 = vadd.f32 %v4454_v2, %v689_v22  ;;  %v486_v43 = vpack.c.bf16 %v471_v31, %v470_v24  ;;  %v487_v44 = vpack.c.bf16 %v473_v33, %v472_v32  ;;  %v475_v3 = vmax.f32 %v459_v55, 0.0 }
  0x6f   : > { %v694_v38 = vmax.f32 %v690_v25, 0.0  ;;  %v695_v39 = vmax.f32 %v691_v26, 0.0  ;;  %v696_v40 = vmax.f32 %v692_v27, 0.0  ;;  %v462_v4 = vadd.f32 %v4454_v2, %v440_v56 }
  0x70   : > { %v697_v45 = vmax.f32 %v693_v34, 0.0  ;;  %3418 = vmatprep.mubr.msk.bf16.mxu0 %vm500_vm0, %v486_v43  ;;  %v463_v5 = vadd.f32 %v4454_v2, %v441_v57  ;;  %v476_v9 = vmax.f32 %v460_v60, 0.0  ;;  %v477_v10 = vmax.f32 %v461_v61, 0.0  ;;  %v3964_v34 = vld [vmem:[#allocation6 + $0x10] sm:$0xff]  }
  0x71   : > { %v698_v49 = vpack.c.bf16 %v695_v39, %v694_v38  ;;  %3419 = vmatmul.mubr.msk.bf16.vlgmr.msra.gmra.mrb[0].mxu0 %vm500_vm0, %v487_v44  ;;  %v464_v11 = vadd.f32 %v4454_v2, %v442_v62  ;;  %v444_v12 = vmul.f32 %v4449_v1, %v422_v47  ;;  %v488_v13 = vpack.c.bf16 %v475_v3, %v474_v59  ;;  %v3970_v38 = vld [vmem:[#allocation6 + $0x28] sm:$0xff]   ;;  %v3967_v39 = vld [vmem:[#allocation6 + $0x120] sm:$0xff]   ;;  %v3971_v43 = vld [vmem:[#allocation6 + $0x130] sm:$0xff]  }
  0x72   : > { %v699_v54 = vpack.c.bf16 %v697_v45, %v696_v40  ;;  %3569 = vmatpush3.bf16.msra.mxu0 %v3959_v48  ;;  %v478_v14 = vmax.f32 %v462_v4, 0.0  ;;  %v479_v15 = vmax.f32 %v463_v5, 0.0  ;;  %v465_v16 = vadd.f32 %v4454_v2, %v443_v6  ;;  %v3972_v40 = vld [vmem:[#allocation6 + $0x30] sm:$0xff]   ;;  %v4525_v44 = vld [vmem:[#allocation6 + $0x40] sm:$0xff]   ;;  %v3973_v45 = vld [vmem:[#allocation6 + $0x138] sm:$0xff]  }
  0x73   : > { %3436 = vmatprep.mubr.msk.bf16.mxu1 %vm500_vm0, %v698_v49  ;;  %3570 = vmatprep.subr.bf16.mxu0 %v3961_v58  ;;  %v489_v17 = vpack.c.bf16 %v477_v10, %v476_v9  ;;  %v445_v18 = vmul.f32 %v4449_v1, %v423_v63  ;;  %v466_v19 = vadd.f32 %v4454_v2, %v444_v12  ;;  %v480_v23 = vmax.f32 %v464_v11, 0.0  ;;  %v4537_v47 = vld [vmem:[%s4901_s22] ss:$0 sm:$0xff]  ;;  %s4806_s20 = scalar_lea.vmem %s4905_s17, %s3169_s30 }
  0x74   : > { %3437 = vmatmul.mubr.msk.bf16.vlgmr.msra.gmra.mrb[0].mxu1 %vm500_vm0, %v699_v54  ;;  %3422 = vmatprep.mubr.msk.bf16.mxu0 %vm500_vm0, %v488_v13  ;;  %v490_v20 = vpack.c.bf16 %v479_v15, %v478_v14  ;;  %v446_v21 = vmul.f32 %v4449_v1, %v424_v7  ;;  %v447_v22 = vmul.f32 %v4449_v1, %v425_v8  ;;  %v481_v24 = vmax.f32 %v465_v16, 0.0  ;;  %v4542_v48 = vld [vmem:[%s4902_s18] ss:$0 sm:$0xff] }
  0x75   : > { %3441 = vmatpush3.bf16.msra.mxu1 %v3960_v53  ;;  %v467_v25 = vadd.f32 %v4454_v2, %v445_v18  ;;  %v482_v28 = vmax.f32 %v466_v19, 0.0  ;;  %v773_v57 = vstv %s769_s25  ;;  %v776_v59 = vstv %s772_s14 }
  0x76   : > { %3442 = vmatprep.subr.bf16.mxu1 %v3962_v0  ;;  %3571 = vmatpush3.bf16.msra.mxu0 %v3961_v58  ;;  %v468_v26 = vadd.f32 %v4454_v2, %v446_v21  ;;  %v469_v27 = vadd.f32 %v4454_v2, %v447_v22  ;;  %v491_v32 = vpack.c.bf16 %v481_v24, %v480_v23  ;;  %v3966_v2 = vld [vmem:[#allocation6 + $0x18] sm:$0xff]  }
  0x77   : > { %v483_v29 = vmax.f32 %v467_v25, 0.0  ;;  %3572 = vmatprep.subr.bf16.mxu0 %v3963_v35 }
  0x78   : > { %v484_v30 = vmax.f32 %v468_v26, 0.0  ;;  %v485_v31 = vmax.f32 %v469_v27, 0.0 }
  0x79   : > { %3443 = vmatpush3.bf16.msra.mxu1 %v3962_v0  ;;  %3423 = vmatmul.mubr.msk.bf16.gmra.mrb[4].mxu0 %vm500_vm0, %v489_v17  ;;  %v492_v1 = vpack.c.bf16 %v483_v29, %v482_v28 }
  0x7a   : > { %3426 = vmatprep.mubr.msk.bf16.mxu0 %vm500_vm0, %v490_v20  ;;  %v493_v33 = vpack.c.bf16 %v485_v31, %v484_v30  ;;  %3444 = vmatprep.subr.bf16.mxu1 %v3964_v34 }
  0x7b   : > { %3573 = vmatpush3.bf16.msra.mxu0 %v3963_v35 }
  0x7c   : > { %3574 = vmatprep.subr.bf16.mxu0 %v3965_v36 }
  0x7d   : > { %3445 = vmatpush3.bf16.msra.mxu1 %v3964_v34 }
  0x7e   : > { %3446 = vmatprep.subr.bf16.mxu1 %v3966_v2 }
  0x7f   : > { %3575 = vmatpush3.bf16.msra.mxu0 %v3965_v36 }
  0x80   : > { %3576 = vmatprep.subr.bf16.mxu0 %v3967_v39 }
  0x81   : > { %3427 = vmatmul.mubr.msk.bf16.gmra.mrb[8].mxu0 %vm500_vm0, %v491_v32  ;;  %3447 = vmatpush3.bf16.msra.mxu1 %v3966_v2 }
  0x82   : > { %3430 = vmatprep.mubr.msk.bf16.mxu0 %vm500_vm0, %v492_v1  ;;  %3448 = vmatprep.subr.bf16.mxu1 %v3968_v37 }
  0x83   : > { %3577 = vmatpush3.bf16.msra.mxu0 %v3967_v39 }
  0x84   : > { %3578 = vmatprep.subr.bf16.mxu0 %v3969_v41 }
  0x85   : > { %3449 = vmatpush3.bf16.msra.mxu1 %v3968_v37 }
  0x86   : > { %3450 = vmatprep.subr.bf16.mxu1 %v3970_v38 }
  0x87   : > { %3579 = vmatpush3.bf16.msra.mxu0 %v3969_v41 }
  0x88   : > { %3580 = vmatprep.subr.bf16.mxu0 %v3971_v43 }
  0x89   : > { %3431 = vmatmul.mubr.msk.bf16.gmra.mrb[12].mxu0 %vm500_vm0, %v493_v33  ;;  %3451 = vmatpush3.bf16.msra.mxu1 %v3970_v38 }
  0x8a   : > { %3452 = vmatprep.subr.bf16.mxu1 %v3972_v40 }
  0x8b   : > { %3581 = vmatpush3.bf16.msra.mxu0 %v3971_v43 }
  0x8c   : > { %3582 = vmatprep.subr.bf16.mxu0 %v3973_v45 }
  0x8d   : > { %3453 = vmatpush3.bf16.msra.mxu1 %v3972_v40 }
  0x8e   : > { %3454 = vmatprep.subr.bf16.mxu1 %v3974_v42 }
  0x8f   : > { %3583 = vmatpush3.bf16.msra.mxu0 %v3973_v45 }
  0x90   : > { %3600 = vmatprep.subr.bf16.mxu0 %v4528_v46 }
  0x91   : > { %3455 = vmatpush3.bf16.msra.mxu1 %v3974_v42 }
  0x92   : > { %3472 = vmatprep.subr.bf16.mxu1 %v4525_v44 }
 0x144   : > { %v3420_v49 = vpop.f32.mrb[0].mxu0 }
 0x145   : > { %v630_v50 = vmul.f32 %v3420_v49, %v4537_v47  ;;  %v559_v51 = vpop.f32.mrb[1].mxu0 }
 0x146   : > { %v628_v53 = vmul.f32 %v4537_v47, %v559_v51  ;;  %v3421_v55 = vpop.f32.mrb[2].mxu0 }
 0x147   : > { %v3438_v52 = vpop.f32.mrb[0].mxu1  ;;  %v652_v58 = vadd.f32 %v4542_v48, %v630_v50  ;;  %v631_v60 = vmul.f32 %v3421_v55, %v4537_v47  ;;  %v562_v62 = vpop.f32.mrb[3].mxu0 }
 0x148   : > { %v757_v54 = vmul.f32 %v3438_v52, %v4537_v47  ;;  %v740_v56 = vpop.f32.mrb[1].mxu1  ;;  %v650_v0 = vadd.f32 %v4542_v48, %v628_v53  ;;  %v629_v4 = vmul.f32 %v4537_v47, %v562_v62 }
 0x149   : > { %v755_v61 = vmul.f32 %v4537_v47, %v740_v56  ;;  %v3439_v63 = vpop.f32.mrb[2].mxu1  ;;  %v668_v7 = vmax.f32 %v652_v58, 0.0  ;;  %v653_v8 = vadd.f32 %v4542_v48, %v631_v60 }
 0x14a   : > { %v761_v3 = vadd.f32 %v4542_v48, %v757_v54  ;;  %v758_v5 = vmul.f32 %v3439_v63, %v4537_v47  ;;  %v743_v6 = vpop.f32.mrb[3].mxu1  ;;  %v666_v11 = vmax.f32 %v650_v0, 0.0  ;;  %v651_v13 = vadd.f32 %v4542_v48, %v629_v4  ;;  %v3978_v0 = vld [vmem:[#allocation6 + $0x48] sm:$0xff]  }
 0x14b   : > { %v759_v9 = vadd.f32 %v4542_v48, %v755_v61  ;;  %v756_v10 = vmul.f32 %v4537_v47, %v743_v6  ;;  %v4559_v15 = vrot.slane %v668_v7, 7  ;;  %v669_v16 = vmax.f32 %v653_v8, 0.0 }
 0x14c   : > { %v765_v12 = vmax.f32 %v761_v3, 0.0  ;;  %v762_v14 = vadd.f32 %v4542_v48, %v758_v5  ;;  %v4562_v19 = vrot.slane %v666_v11, 7  ;;  %v667_v21 = vmax.f32 %v651_v13, 0.0  ;;  %v3424_v23 = vpop.f32.mrb[4].mxu0 }
 0x14d   : > { %v763_v17 = vmax.f32 %v759_v9, 0.0  ;;  %v760_v18 = vadd.f32 %v4542_v48, %v756_v10  ;;  %v872_v24 = vsel %vm781_vm1, 0.0, %v4559_v15  ;;  %v827_v25 = vrot.slane %v669_v16, 7  ;;  %v575_v28 = vpop.f32.mrb[5].mxu0 }
 0x14e   : > { %v777_v20 = vmul.f32 %v776_v59, %v765_v12  ;;  %v766_v22 = vmax.f32 %v762_v14, 0.0  ;;  %891 = vst [vmem:[#allocation2 + $0x30] sm:$0xff] %v872_v24  ;;  %v871_v29 = vsel %vm781_vm1, 0.0, %v4562_v19  ;;  %v824_v31 = vrot.slane %v667_v21, 7  ;;  %v3425_v1 = vpop.f32.mrb[6].mxu0 }
 0x14f   : > { %v774_v26 = vmul.f32 %v773_v57, %v763_v17  ;;  %v764_v27 = vmax.f32 %v760_v18, 0.0  ;;  %888 = vst [vmem:[#allocation2 + $0x18] sm:$0xff] %v871_v29  ;;  %v828_v33 = vsel %vm781_vm1, %v4559_v15, %v827_v25  ;;  %v880_v34 = vsel %vm781_vm1, %v827_v25, 0.0  ;;  %v578_v36 = vpop.f32.mrb[7].mxu0 }
 0x150   : > { %v795_v30 = vrot.slane %v777_v20, 7  ;;  %v778_v32 = vmul.f32 %v776_v59, %v766_v22  ;;  %892 = vst [vmem:[#allocation2 + $0x38] sm:$0xff] %v828_v33  ;;  %893 = vst [vmem:[#allocation2 + $0x40] sm:$0x3] %v880_v34  ;;  %v825_v38 = vsel %vm781_vm1, %v4562_v19, %v824_v31  ;;  %v879_v39 = vsel %vm781_vm1, %v824_v31, 0.0 }
 0x151   : > { %v782_v2 = vrot.slane %v774_v26, 7  ;;  %v775_v35 = vmul.f32 %v773_v57, %v764_v27  ;;  %889 = vst [vmem:[#allocation2 + $0x20] sm:$0xff] %v825_v38  ;;  %890 = vst [vmem:[#allocation2 + $0x28] sm:$0x3] %v879_v39  ;;  %v634_v43 = vmul.f32 %v3424_v23, %v4537_v47  ;;  %v632_v45 = vmul.f32 %v4537_v47, %v575_v28 }
 0x152   : > { %v801_v37 = vsel %vm781_vm1, 0.0, %v795_v30  ;;  %v796_v40 = vrot.slane %v778_v32, 7  ;;  %v635_v51 = vmul.f32 %v3425_v1, %v4537_v47  ;;  %v633_v52 = vmul.f32 %v4537_v47, %v578_v36 }
 0x153   : > { %804 = vst [vmem:[#allocation2 + $0xd8] sm:$0xff] %v801_v37  ;;  %v788_v41 = vsel %vm781_vm1, 0.0, %v782_v2  ;;  %v783_v42 = vrot.slane %v775_v35, 7  ;;  %v656_v55 = vadd.f32 %v4542_v48, %v634_v43  ;;  %v654_v56 = vadd.f32 %v4542_v48, %v632_v45 }
 0x154   : > { %790 = vst [vmem:[#allocation2] sm:$0xff] %v788_v41  ;;  %v797_v49 = vsel %vm781_vm1, %v795_v30, %v796_v40  ;;  %v802_v50 = vsel %vm781_vm1, %v796_v40, 0.0  ;;  %v657_v57 = vadd.f32 %v4542_v48, %v635_v51  ;;  %v655_v58 = vadd.f32 %v4542_v48, %v633_v52  ;;  %v3428_v59 = vpop.f32.mrb[8].mxu0 }
 0x155   : > { %805 = vst [vmem:[#allocation2 + $0xe0] sm:$0xff] %v797_v49  ;;  %806 = vst [vmem:[#allocation2 + $0xe8] sm:$0x3] %v802_v50  ;;  %v784_v53 = vsel %vm781_vm1, %v782_v2, %v783_v42  ;;  %v789_v54 = vsel %vm781_vm1, %v783_v42, 0.0  ;;  %v672_v60 = vmax.f32 %v656_v55, 0.0  ;;  %v670_v61 = vmax.f32 %v654_v56, 0.0 }
 0x156   : > { %791 = vst [vmem:[#allocation2 + $0x8] sm:$0xff] %v784_v53  ;;  %792 = vst [vmem:[#allocation2 + $0x10] sm:$0x3] %v789_v54  ;;  %v638_v62 = vmul.f32 %v3428_v59, %v4537_v47  ;;  %v591_v63 = vpop.f32.mrb[9].mxu0  ;;  %v673_v3 = vmax.f32 %v657_v57, 0.0  ;;  %v671_v4 = vmax.f32 %v655_v58, 0.0  ;;  %v4033_v8 = vpack.c.bf16 %v784_v53, %v782_v2 }
 0x157   : > { %v636_v5 = vmul.f32 %v4537_v47, %v591_v63  ;;  %v3429_v6 = vpop.f32.mrb[10].mxu0  ;;  %v4597_v9 = vrot.slane %v672_v60, 7  ;;  %v829_v10 = vrot.slane %v670_v61, 7  ;;  %v4037_v14 = vpack.c.bf16 %v825_v38, %v4562_v19  ;;  %v1817_v21 = vld [vmem:[#allocation2 + $0x31] sm:$0xff]  ;;  %v3980_v19 = vld [vmem:[#allocation6 + $0x50] sm:$0xff]   ;;  %v3982_v50 = vld [vmem:[#allocation6 + $0x58] sm:$0xff]  }
 0x158   : > { %4034 = vmatprep.mubr.msk.bf16.mxu1 %vm4591_vm4, %v4033_v8  ;;  %v660_v11 = vadd.f32 %v4542_v48, %v638_v62  ;;  %v639_v12 = vmul.f32 %v3429_v6, %v4537_v47  ;;  %v594_v13 = vpop.f32.mrb[11].mxu0  ;;  %v833_v16 = vrot.slane %v673_v3, 7  ;;  %v830_v17 = vrot.slane %v671_v4, 7  ;;  %v1815_v27 = vld [vmem:[#allocation2 + $0x19] sm:$0xff]  ;;  %v1816_v28 = vld [vmem:[#allocation2 + $0x21] sm:$0xff]  ;;  %v1583_v7 = vld [vmem:[#allocation2 + $0x30] sm:$0xff] }
 0x159   : > { %4038 = vmatmul.mubr.msk.bf16.vlgmr.msra.gmra.mrb[4].mxu1 %vm4591_vm4, %v4037_v14  ;;  %v658_v18 = vadd.f32 %v4542_v48, %v636_v5  ;;  %v637_v20 = vmul.f32 %v4537_v47, %v594_v13  ;;  %v4608_v22 = vpack.c.bf16 %v828_v33, %v4559_v15  ;;  %v874_v23 = vsel %vm781_vm1, 0.0, %v4597_v9  ;;  %v1818_v29 = vld [vmem:[#allocation2 + $0x39] sm:$0xff] }
 0x15a   : > { %3473 = vmatpush3.bf16.msra.mxu1 %v4525_v44  ;;  %v873_v24 = vsel %vm781_vm1, 0.0, %v829_v10  ;;  %v676_v25 = vmax.f32 %v660_v11, 0.0  ;;  %v661_v26 = vadd.f32 %v4542_v48, %v639_v12  ;;  %897 = vst [vmem:[#allocation2 + $0x60] sm:$0xff] %v874_v23  ;;  %v834_v44 = vsel %vm781_vm1, %v4597_v9, %v833_v16  ;;  %v3977_v42 = vld [vmem:[#allocation6 + $0x148] sm:$0xff]   ;;  %v3979_v63 = vld [vmem:[#allocation6 + $0x150] sm:$0xff]   ;;  %v3984_v12 = vld [vmem:[#allocation6 + $0x60] sm:$0xff]  }
 0x15b   : > { %4042 = vmatprep.mubr.msk.bf16.mxu1 %vm4591_vm4, %v4608_v22  ;;  %3474 = vmatprep.subr.bf16.mxu1 %v3978_v0  ;;  %894 = vst [vmem:[#allocation2 + $0x48] sm:$0xff] %v873_v24  ;;  %v882_v15 = vsel %vm781_vm1, %v833_v16, 0.0  ;;  %v831_v30 = vsel %vm781_vm1, %v829_v10, %v830_v17  ;;  %v881_v31 = vsel %vm781_vm1, %v830_v17, 0.0  ;;  %898 = vst [vmem:[#allocation2 + $0x68] sm:$0xff] %v834_v44  ;;  %v674_v1 = vmax.f32 %v658_v18, 0.0  ;;  %v3986_v23 = vld [vmem:[#allocation6 + $0x68] sm:$0xff]  }
 0x15c   : > { %899 = vst [vmem:[#allocation2 + $0x70] sm:$0x3] %v882_v15  ;;  %895 = vst [vmem:[#allocation2 + $0x50] sm:$0xff] %v831_v30  ;;  %v4622_v32 = vrot.slane %v676_v25, 7  ;;  %v677_v33 = vmax.f32 %v661_v26, 0.0  ;;  %v659_v34 = vadd.f32 %v4542_v48, %v637_v20  ;;  %v4625_v2 = vpack.c.bf16 %v1816_v28, %v1815_v27  ;;  %v3432_v35 = vpop.f32.mrb[12].mxu0 }
 0x15d   : > { %896 = vst [vmem:[#allocation2 + $0x58] sm:$0x3] %v881_v31  ;;  %v4627_v36 = vpack.c.bf16 %v1818_v29, %v1817_v21  ;;  %v4631_v38 = vrot.slane %v674_v1, 7  ;;  %v607_v41 = vpop.f32.mrb[13].mxu0  ;;  %v642_v43 = vmul.f32 %v3432_v35, %v4537_v47  ;;  %v4644_v56 = vpack.c.bf16 %v831_v30, %v829_v10  ;;  %v3983_v15 = vld [vmem:[#allocation6 + $0x160] sm:$0xff]   ;;  %v1113_v35 = vld [vmem:[#allocation2 + $0x1] sm:$0xff] }
 0x15e   : > { %3475 = vmatpush3.bf16.msra.mxu1 %v3978_v0  ;;  %v876_v37 = vsel %vm781_vm1, 0.0, %v4622_v32  ;;  %v839_v39 = vrot.slane %v677_v33, 7  ;;  %v675_v40 = vmax.f32 %v659_v34, 0.0  ;;  %3584 = vmatprep.mubr.bf16.mxu0 %v4625_v2  ;;  %v640_v45 = vmul.f32 %v4537_v47, %v607_v41  ;;  %v3433_v49 = vpop.f32.mrb[14].mxu0  ;;  %v3988_v34 = vld [vmem:[#allocation6 + $0x70] sm:$0xff]  }
 0x15f   : > { %3476 = vmatprep.subr.bf16.mxu1 %v3980_v19  ;;  %903 = vst [vmem:[#allocation2 + $0x90] sm:$0xff] %v876_v37  ;;  %v875_v51 = vsel %vm781_vm1, 0.0, %v4631_v38  ;;  %3585 = vmatmul.mubr.bf16.vlgmr.msra.gmra.mrb[16].mxu0 %v4627_v36  ;;  %v610_v55 = vpop.f32.mrb[15].mxu0  ;;  %v664_v57 = vadd.f32 %v4542_v48, %v642_v43  ;;  %v643_v59 = vmul.f32 %v3433_v49, %v4537_v47  ;;  %v1114_v37 = vld [vmem:[#allocation2 + $0x9] sm:$0xff]  ;;  %v3987_v49 = vld [vmem:[#allocation6 + $0x170] sm:$0xff]  }
 0x160   : > { %v4640_v52 = vsel %vm781_vm1, %v4622_v32, %v839_v39  ;;  %v884_v53 = vsel %vm781_vm1, %v839_v39, 0.0  ;;  %v836_v54 = vrot.slane %v675_v40, 7  ;;  %900 = vst [vmem:[#allocation2 + $0x78] sm:$0xff] %v875_v51  ;;  %v662_v58 = vadd.f32 %v4542_v48, %v640_v45  ;;  %3601 = vmatpush3.bf16.msra.mxu0 %v4528_v46  ;;  %v3990_v40 = vld [vmem:[#allocation6 + $0x78] sm:$0xff]  }
 0x161   : > { %4046 = vmatmul.mubr.msk.bf16.gmra.mrb[8].mxu1 %vm4591_vm4, %v4644_v56  ;;  %904 = vst [vmem:[#allocation2 + $0x98] sm:$0xff] %v4640_v52  ;;  %905 = vst [vmem:[#allocation2 + $0xa0] sm:$0x3] %v884_v53  ;;  %v641_v60 = vmul.f32 %v4537_v47, %v610_v55  ;;  %3602 = vmatprep.subr.bf16.mxu0 %v3977_v42  ;;  %v680_v0 = vmax.f32 %v664_v57, 0.0  ;;  %v665_v4 = vadd.f32 %v4542_v48, %v643_v59  ;;  %v2050_v53 = vld [vmem:[#allocation2 + $0x22] sm:$0xff]  ;;  %v3994_v59 = vld [vmem:[#allocation6 + $0x88] sm:$0xff]  }
 0x162   : > { %v837_v61 = vsel %vm781_vm1, %v4631_v38, %v836_v54  ;;  %v883_v62 = vsel %vm781_vm1, %v836_v54, 0.0  ;;  %3477 = vmatpush3.bf16.msra.mxu1 %v3980_v19  ;;  %v678_v3 = vmax.f32 %v662_v58, 0.0  ;;  %v1821_v8 = vld [vmem:[#allocation2 + $0x61] sm:$0xff]  ;;  %v4661_v47 = vpack.c.bf16 %v834_v44, %v4597_v9  ;;  %v3992_v54 = vld [vmem:[#allocation6 + $0x80] sm:$0xff]  }
 0x163   : > { %901 = vst [vmem:[#allocation2 + $0x80] sm:$0xff] %v837_v61  ;;  %902 = vst [vmem:[#allocation2 + $0x88] sm:$0x3] %v883_v62  ;;  %v663_v46 = vadd.f32 %v4542_v48, %v641_v60  ;;  %v1819_v5 = vld [vmem:[#allocation2 + $0x49] sm:$0xff]  ;;  %3478 = vmatprep.subr.bf16.mxu1 %v3982_v50  ;;  %v4668_v13 = vrot.slane %v680_v0, 7  ;;  %v681_v16 = vmax.f32 %v665_v4, 0.0  ;;  %v4687_v28 = vpack.c.bf16 %v837_v61, %v4631_v38 }
 0x164   : > { %v1820_v6 = vld [vmem:[#allocation2 + $0x51] sm:$0xff]  ;;  %4050 = vmatprep.mubr.msk.bf16.mxu1 %vm4591_vm4, %v4661_v47  ;;  %v1822_v11 = vld [vmem:[#allocation2 + $0x69] sm:$0xff]  ;;  %v841_v14 = vrot.slane %v678_v3, 7  ;;  %3603 = vmatpush3.bf16.msra.mxu0 %v3977_v42  ;;  %v4696_v30 = vpack.c.bf16 %v4640_v52, %v4622_v32  ;;  %v1129_v39 = vpack.c.bf16 %v1114_v37, %v1113_v35  ;;  %v2049_v52 = vld [vmem:[#allocation2 + $0x1a] sm:$0xff] }
 0x165   : > { %v4666_v10 = vpack.c.bf16 %v1820_v6, %v1819_v5  ;;  %v679_v48 = vmax.f32 %v663_v46, 0.0  ;;  %v4671_v17 = vpack.c.bf16 %v1822_v11, %v1821_v8  ;;  %3604 = vmatprep.subr.bf16.mxu0 %v3979_v63  ;;  %v3981_v9 = vld [vmem:[#allocation6 + $0x158] sm:$0xff]   ;;  %v878_v18 = vsel %vm781_vm1, 0.0, %v4668_v13  ;;  %v3985_v32 = vld [vmem:[#allocation6 + $0x168] sm:$0xff]   ;;  %v3991_v60 = vld [vmem:[#allocation6 + $0x180] sm:$0xff]  }
 0x166   : > { %v877_v20 = vsel %vm781_vm1, 0.0, %v841_v14  ;;  %v845_v21 = vrot.slane %v681_v16, 7  ;;  %3479 = vmatpush3.bf16.msra.mxu1 %v3982_v50  ;;  %909 = vst [vmem:[#allocation2 + $0xc0] sm:$0xff] %v878_v18  ;;  %v3989_v57 = vld [vmem:[#allocation6 + $0x178] sm:$0xff]   ;;  %v4718_v58 = vpack.c.bf16 %v2050_v53, %v2049_v52  ;;  %v2051_v61 = vld [vmem:[#allocation2 + $0x32] sm:$0xff]  ;;  %v2052_v62 = vld [vmem:[#allocation2 + $0x3a] sm:$0xff] }
 0x167   : > { %3588 = vmatprep.mubr.bf16.mxu0 %v4666_v10  ;;  %v842_v19 = vrot.slane %v679_v48, 7  ;;  %906 = vst [vmem:[#allocation2 + $0xa8] sm:$0xff] %v877_v20  ;;  %3480 = vmatprep.subr.bf16.mxu1 %v3984_v12  ;;  %v2054_v0 = vld [vmem:[#allocation2 + $0x52] sm:$0xff]  ;;  %v3996_v3 = vld [vmem:[#allocation6 + $0x90] sm:$0xff]   ;;  %v4724_v4 = vpack.c.bf16 %v2052_v62, %v2051_v61  ;;  %v2056_v11 = vld [vmem:[#allocation2 + $0x6a] sm:$0xff] }
 0x168   : > { %3589 = vmatmul.mubr.bf16.gmra.mrb[20].mxu0 %v4671_v17  ;;  %v4679_v24 = vsel %vm781_vm1, %v4668_v13, %v845_v21  ;;  %v886_v25 = vsel %vm781_vm1, %v845_v21, 0.0  ;;  %v1825_v1 = vld [vmem:[#allocation2 + $0x91] sm:$0xff]  ;;  %v1826_v33 = vld [vmem:[#allocation2 + $0x99] sm:$0xff]  ;;  %v2055_v8 = vld [vmem:[#allocation2 + $0x62] sm:$0xff] }
 0x169   : > { %v4683_v26 = vsel %vm781_vm1, %v841_v14, %v842_v19  ;;  %v885_v27 = vsel %vm781_vm1, %v842_v19, 0.0  ;;  %3605 = vmatpush3.bf16.msra.mxu0 %v3979_v63  ;;  %4054 = vmatmul.mubr.msk.bf16.gmra.mrb[12].mxu1 %vm4591_vm4, %v4687_v28  ;;  %910 = vst [vmem:[#allocation2 + $0xc8] sm:$0xff] %v4679_v24  ;;  %911 = vst [vmem:[#allocation2 + $0xd0] sm:$0x3] %v886_v25  ;;  %v4704_v38 = vpack.c.bf16 %v1826_v33, %v1825_v1  ;;  %v2053_v63 = vld [vmem:[#allocation2 + $0x4a] sm:$0xff]  ;;  %v3993_v46 = vld [vmem:[#allocation6 + $0x188] sm:$0xff]  }
 0x16a   : > { %907 = vst [vmem:[#allocation2 + $0xb0] sm:$0xff] %v4683_v26  ;;  %908 = vst [vmem:[#allocation2 + $0xb8] sm:$0x3] %v885_v27  ;;  %3606 = vmatprep.subr.bf16.mxu0 %v3981_v9  ;;  %v1823_v29 = vld [vmem:[#allocation2 + $0x79] sm:$0xff]  ;;  %v1824_v44 = vld [vmem:[#allocation2 + $0x81] sm:$0xff]  ;;  %4058 = vmatprep.mubr.msk.bf16.mxu1 %vm4591_vm4, %v4696_v30  ;;  %v4708_v43 = vpack.c.bf16 %v4683_v26, %v841_v14  ;;  %v4726_v5 = vpack.c.bf16 %v2054_v0, %v2053_v63 }
 0x16b   : > { %v4701_v31 = vpack.c.bf16 %v1824_v44, %v1823_v29  ;;  %3481 = vmatpush3.bf16.msra.mxu1 %v3984_v12  ;;  %v3995_v6 = vld [vmem:[#allocation6 + $0x190] sm:$0xff]   ;;  %v4000_v16 = vld [vmem:[#allocation6 + $0xa0] sm:$0xff]   ;;  %v4732_v48 = vpack.c.bf16 %v2056_v11, %v2055_v8  ;;  %v4002_v20 = vld [vmem:[#allocation6 + $0xa8] sm:$0xff]   ;;  %v4089_v62 = vpack.c.bf16 %v4679_v24, %v4668_v13 }
 0x16c   : > { %3482 = vmatprep.subr.bf16.mxu1 %v3986_v23  ;;  %v2057_v12 = vld [vmem:[#allocation2 + $0x7a] sm:$0xff]  ;;  %v2058_v14 = vld [vmem:[#allocation2 + $0x82] sm:$0xff]  ;;  %v3999_v21 = vld [vmem:[#allocation6 + $0x1a0] sm:$0xff]  }
 0x16d   : > { %3607 = vmatpush3.bf16.msra.mxu0 %v3981_v9  ;;  %3592 = vmatprep.mubr.bf16.mxu0 %v4701_v31  ;;  %v3997_v9 = vld [vmem:[#allocation6 + $0x198] sm:$0xff]   ;;  %v4734_v18 = vpack.c.bf16 %v2058_v14, %v2057_v12  ;;  %v2059_v19 = vld [vmem:[#allocation2 + $0x92] sm:$0xff]  ;;  %v4004_v29 = vld [vmem:[#allocation6 + $0xb0] sm:$0xff]  }
 0x16e   : > { %3608 = vmatprep.subr.bf16.mxu0 %v3983_v15  ;;  %v1347_v1 = vld [vmem:[#allocation2 + $0x2] sm:$0xff]  ;;  %v1348_v33 = vld [vmem:[#allocation2 + $0xa] sm:$0xff]  ;;  %v4009_v53 = vld [vmem:[#allocation6 + $0x1c8] sm:$0xff]  }
 0x16f   : > { %3483 = vmatpush3.bf16.msra.mxu1 %v3986_v23  ;;  %v2060_v23 = vld [vmem:[#allocation2 + $0x9a] sm:$0xff]  ;;  %v4006_v35 = vld [vmem:[#allocation6 + $0xb8] sm:$0xff]   ;;  %v1363_v37 = vpack.c.bf16 %v1348_v33, %v1347_v1  ;;  %v1586_v24 = vld [vmem:[#allocation2 + $0x50] sm:$0xff] }
 0x170   : > { %3593 = vmatmul.mubr.bf16.gmra.mrb[24].mxu0 %v4704_v38  ;;  %3484 = vmatprep.subr.bf16.mxu1 %v3988_v34  ;;  %v1829_v50 = vld [vmem:[#allocation2 + $0xc1] sm:$0xff]  ;;  %v1830_v51 = vld [vmem:[#allocation2 + $0xc9] sm:$0xff]  ;;  %v4740_v44 = vpack.c.bf16 %v2060_v23, %v2059_v19  ;;  %v4024_v12 = vld [vmem:[#allocation6 + $0x208] sm:$0xff]  }
 0x171   : > { %3609 = vmatpush3.bf16.msra.mxu0 %v3983_v15  ;;  %v1827_v41 = vld [vmem:[#allocation2 + $0xa9] sm:$0xff]  ;;  %v1828_v42 = vld [vmem:[#allocation2 + $0xb1] sm:$0xff]  ;;  %4062 = vmatmul.mubr.msk.bf16.gmra.mrb[16].mxu1 %vm4591_vm4, %v4708_v43  ;;  %v4716_v55 = vpack.c.bf16 %v1830_v51, %v1829_v50  ;;  %v4012_v52 = vld [vmem:[#allocation6 + $0xd0] sm:$0xff]  }
 0x172   : > { %3610 = vmatprep.subr.bf16.mxu0 %v3985_v32  ;;  %v4713_v45 = vpack.c.bf16 %v1828_v42, %v1827_v41  ;;  %3488 = vmatprep.mubr.bf16.mxu1 %v1129_v39  ;;  %v2061_v25 = vld [vmem:[#allocation2 + $0xaa] sm:$0xff]  ;;  %v2062_v27 = vld [vmem:[#allocation2 + $0xb2] sm:$0xff]  ;;  %v2063_v39 = vld [vmem:[#allocation2 + $0xc2] sm:$0xff] }
 0x173   : > { %3485 = vmatpush3.bf16.msra.mxu1 %v3988_v34  ;;  %v4001_v15 = vld [vmem:[#allocation6 + $0x1a8] sm:$0xff]   ;;  %v4742_v34 = vpack.c.bf16 %v2062_v27, %v2061_v25  ;;  %v4008_v41 = vld [vmem:[#allocation6 + $0xc0] sm:$0xff]   ;;  %v4022_v61 = vld [vmem:[#allocation6 + $0xf8] sm:$0xff]  }
 0x174   : > { %3596 = vmatprep.mubr.bf16.mxu0 %v4713_v45  ;;  %3486 = vmatprep.subr.bf16.mxu1 %v3990_v40  ;;  %v4010_v50 = vld [vmem:[#allocation6 + $0xc8] sm:$0xff]   ;;  %v4007_v51 = vld [vmem:[#allocation6 + $0x1c0] sm:$0xff]   ;;  %v4019_v0 = vld [vmem:[#allocation6 + $0x1f0] sm:$0xff]  }
 0x175   : > { %3611 = vmatpush3.bf16.msra.mxu0 %v3985_v32  ;;  %v4003_v32 = vld [vmem:[#allocation6 + $0x1b0] sm:$0xff]   ;;  %v4021_v13 = vld [vmem:[#allocation6 + $0x1f8] sm:$0xff]   ;;  %v1589_v23 = vld [vmem:[#allocation2 + $0x78] sm:$0xff] }
 0x176   : > { %3612 = vmatprep.subr.bf16.mxu0 %v3987_v49  ;;  %v1585_v11 = vld [vmem:[#allocation2 + $0x48] sm:$0xff]  ;;  %v4027_v27 = vld [vmem:[#allocation6 + $0x220] sm:$0xff]   ;;  %v4028_v33 = vld [vmem:[#allocation6 + $0x228] sm:$0xff]  }
 0x177   : > { %3487 = vmatpush3.bf16.msra.mxu1 %v3990_v40  ;;  %v2064_v40 = vld [vmem:[#allocation2 + $0xca] sm:$0xff]  ;;  %v1599_v14 = vpack.c.bf16 %v1586_v24, %v1585_v11 }
 0x178   : > { %3597 = vmatmul.mubr.bf16.gmra.mrb[28].mxu0 %v4716_v55  ;;  %3504 = vmatprep.subr.bf16.mxu1 %v3992_v54  ;;  %v4747_v42 = vpack.c.bf16 %v2064_v40, %v2063_v39  ;;  %v4026_v25 = vld [vmem:[#allocation6 + $0x218] sm:$0xff]  }
 0x179   : > { %3613 = vmatpush3.bf16.msra.mxu0 %v3987_v49  ;;  %3616 = vmatprep.mubr.bf16.mxu0 %v4718_v58  ;;  %v4005_v49 = vld [vmem:[#allocation6 + $0x1b8] sm:$0xff]  }
 0x17a   : > { %3614 = vmatprep.subr.bf16.mxu0 %v3989_v57  ;;  %3489 = vmatmul.mubr.bf16.vlgmr.msra.gmra.mrb[4].mxu1 %v4625_v2  ;;  %v3998_v2 = vld [vmem:[#allocation6 + $0x98] sm:$0xff]  }
 0x17b   : > { %3505 = vmatpush3.bf16.msra.mxu1 %v3992_v54  ;;  %3492 = vmatprep.mubr.bf16.mxu1 %v4627_v36  ;;  %v4014_v54 = vld [vmem:[#allocation6 + $0xd8] sm:$0xff]  }
 0x17c   : > { %3506 = vmatprep.subr.bf16.mxu1 %v3994_v59  ;;  %v4030_v39 = vld [vmem:[#allocation6 + $0x238] sm:$0xff]  }
 0x17d   : > { %3615 = vmatpush3.bf16.msra.mxu0 %v3989_v57  ;;  %v4016_v57 = vld [vmem:[#allocation6 + $0xe0] sm:$0xff]  }
 0x17e   : > { %3632 = vmatprep.subr.bf16.mxu0 %v3991_v60 }
 0x17f   : > { %3507 = vmatpush3.bf16.msra.mxu1 %v3994_v59  ;;  %v4020_v59 = vld [vmem:[#allocation6 + $0xf0] sm:$0xff]  }
 0x180   : > { %3617 = vmatmul.mubr.bf16.vlgmr.msra.gmra.mrb[16].mxu0 %v4724_v4  ;;  %3508 = vmatprep.subr.bf16.mxu1 %v3996_v3 }
 0x181   : > { %3620 = vmatprep.mubr.bf16.mxu0 %v4726_v5  ;;  %3633 = vmatpush3.bf16.msra.mxu0 %v3991_v60  ;;  %v4017_v60 = vld [vmem:[#allocation6 + $0x1e8] sm:$0xff]  }
 0x182   : > { %3634 = vmatprep.subr.bf16.mxu0 %v3993_v46  ;;  %3493 = vmatmul.mubr.bf16.gmra.mrb[8].mxu1 %v4666_v10 }
 0x183   : > { %3509 = vmatpush3.bf16.msra.mxu1 %v3996_v3  ;;  %3496 = vmatprep.mubr.bf16.mxu1 %v4671_v17  ;;  %v2298_v3 = vld [vmem:[#allocation2 + $0xd8] sm:$0xff] }
 0x184   : > { %3510 = vmatprep.subr.bf16.mxu1 %v3998_v2 }
 0x185   : > { %3635 = vmatpush3.bf16.msra.mxu0 %v3993_v46  ;;  %v2299_v46 = vld [vmem:[#allocation2 + $0xe0] sm:$0xff] }
 0x186   : > { %3636 = vmatprep.subr.bf16.mxu0 %v3995_v6 }
 0x187   : > { %3511 = vmatpush3.bf16.msra.mxu1 %v3998_v2  ;;  %v1584_v2 = vld [vmem:[#allocation2 + $0x38] sm:$0xff] }
 0x188   : > { %3621 = vmatmul.mubr.bf16.gmra.mrb[20].mxu0 %v4732_v48  ;;  %3512 = vmatprep.subr.bf16.mxu1 %v4000_v16  ;;  %v1598_v8 = vpack.c.bf16 %v1584_v2, %v1583_v7 }
 0x189   : > { %3624 = vmatprep.mubr.bf16.mxu0 %v4734_v18  ;;  %3637 = vmatpush3.bf16.msra.mxu0 %v3995_v6  ;;  %v2307_v6 = vpack.c.bf16 %v2299_v46, %v2298_v3 }
 0x18a   : > { %3638 = vmatprep.subr.bf16.mxu0 %v3997_v9  ;;  %3497 = vmatmul.mubr.bf16.gmra.mrb[12].mxu1 %v4701_v31 }
 0x18b   : > { %3513 = vmatpush3.bf16.msra.mxu1 %v4000_v16  ;;  %3500 = vmatprep.mubr.bf16.mxu1 %v4704_v38  ;;  %v4025_v16 = vld [vmem:[#allocation6 + $0x210] sm:$0xff]  }
 0x18c   : > { %3514 = vmatprep.subr.bf16.mxu1 %v4002_v20 }
 0x18d   : > { %3639 = vmatpush3.bf16.msra.mxu0 %v3997_v9  ;;  %v1588_v9 = vld [vmem:[#allocation2 + $0x68] sm:$0xff] }
 0x18e   : > { %3640 = vmatprep.subr.bf16.mxu0 %v3999_v21 }
 0x18f   : > { %3515 = vmatpush3.bf16.msra.mxu1 %v4002_v20  ;;  %v1590_v20 = vld [vmem:[#allocation2 + $0x80] sm:$0xff] }
 0x190   : > { %3625 = vmatmul.mubr.bf16.gmra.mrb[24].mxu0 %v4740_v44  ;;  %3516 = vmatprep.subr.bf16.mxu1 %v4004_v29 }
 0x191   : > { %3628 = vmatprep.mubr.bf16.mxu0 %v4742_v34  ;;  %3641 = vmatpush3.bf16.msra.mxu0 %v3999_v21  ;;  %v1587_v21 = vld [vmem:[#allocation2 + $0x60] sm:$0xff] }
 0x192   : > { %3642 = vmatprep.subr.bf16.mxu0 %v4001_v15  ;;  %3501 = vmatmul.mubr.bf16.gmra.mrb[16].mxu1 %v4713_v45  ;;  %v1600_v19 = vpack.c.bf16 %v1588_v9, %v1587_v21 }
 0x193   : > { %3517 = vmatpush3.bf16.msra.mxu1 %v4004_v29  ;;  %3520 = vmatprep.mubr.bf16.mxu1 %v1363_v37  ;;  %v1592_v29 = vld [vmem:[#allocation2 + $0x98] sm:$0xff]  ;;  %v1596_v37 = vld [vmem:[#allocation2 + $0xc8] sm:$0xff] }
 0x194   : > { %3518 = vmatprep.subr.bf16.mxu1 %v4006_v35 }
 0x195   : > { %3643 = vmatpush3.bf16.msra.mxu0 %v4001_v15  ;;  %v1593_v15 = vld [vmem:[#allocation2 + $0xa8] sm:$0xff] }
 0x196   : > { %3644 = vmatprep.subr.bf16.mxu0 %v4003_v32 }
 0x197   : > { %3519 = vmatpush3.bf16.msra.mxu1 %v4006_v35  ;;  %v4029_v35 = vld [vmem:[#allocation6 + $0x230] sm:$0xff]  }
 0x198   : > { %3629 = vmatmul.mubr.bf16.gmra.mrb[28].mxu0 %v4747_v42  ;;  %3536 = vmatprep.subr.bf16.mxu1 %v4008_v41 }
 0x199   : > { %3645 = vmatpush3.bf16.msra.mxu0 %v4003_v32  ;;  %4066 = vmatprep.mubr.msk.bf16.mxu0 %vm4591_vm4, %v4608_v22  ;;  %v4011_v22 = vld [vmem:[#allocation6 + $0x1d0] sm:$0xff]  }
 0x19a   : > { %3646 = vmatprep.subr.bf16.mxu0 %v4005_v49  ;;  %3521 = vmatmul.mubr.bf16.vlgmr.msra.gmra.mrb[4].mxu1 %v4718_v58  ;;  %v4013_v58 = vld [vmem:[#allocation6 + $0x1d8] sm:$0xff]   ;;  %v1595_v32 = vld [vmem:[#allocation2 + $0xc0] sm:$0xff] }
 0x19b   : > { %3537 = vmatpush3.bf16.msra.mxu1 %v4008_v41  ;;  %3524 = vmatprep.mubr.bf16.mxu1 %v4724_v4 }
 0x19c   : > { %3538 = vmatprep.subr.bf16.mxu1 %v4010_v50 }
 0x19d   : > { %3647 = vmatpush3.bf16.msra.mxu0 %v4005_v49 }
 0x19e   : > { %3664 = vmatprep.subr.bf16.mxu0 %v4007_v51 }
 0x19f   : > { %3539 = vmatpush3.bf16.msra.mxu1 %v4010_v50 }
 0x1a0   : > { %4070 = vmatmul.mubr.msk.bf16.vlgmr.msra.gmra.mrb[16].mxu0 %vm4591_vm4, %v4644_v56  ;;  %3540 = vmatprep.subr.bf16.mxu1 %v4012_v52  ;;  %v4018_v56 = vld [vmem:[#allocation6 + $0xe8] sm:$0xff]  }
 0x1a1   : > { %4074 = vmatprep.mubr.msk.bf16.mxu0 %vm4591_vm4, %v4661_v47  ;;  %3665 = vmatpush3.bf16.msra.mxu0 %v4007_v51  ;;  %v4015_v47 = vld [vmem:[#allocation6 + $0x1e0] sm:$0xff]  }
 0x1a2   : > { %3666 = vmatprep.subr.bf16.mxu0 %v4009_v53  ;;  %3525 = vmatmul.mubr.bf16.gmra.mrb[8].mxu1 %v4726_v5 }
 0x1a3   : > { %3541 = vmatpush3.bf16.msra.mxu1 %v4012_v52  ;;  %3528 = vmatprep.mubr.bf16.mxu1 %v4732_v48 }
 0x1a4   : > { %3542 = vmatprep.subr.bf16.mxu1 %v4014_v54 }
 0x1a5   : > { %3667 = vmatpush3.bf16.msra.mxu0 %v4009_v53 }
 0x1a6   : > { %3668 = vmatprep.subr.bf16.mxu0 %v4011_v22 }
 0x1a7   : > { %3543 = vmatpush3.bf16.msra.mxu1 %v4014_v54 }
 0x1a8   : > { %4078 = vmatmul.mubr.msk.bf16.gmra.mrb[20].mxu0 %vm4591_vm4, %v4687_v28  ;;  %3544 = vmatprep.subr.bf16.mxu1 %v4016_v57  ;;  %v1582_v28 = vld [vmem:[#allocation2 + $0x20] sm:$0xff] }
 0x1a9   : > { %4082 = vmatprep.mubr.msk.bf16.mxu0 %vm4591_vm4, %v4696_v30  ;;  %3669 = vmatpush3.bf16.msra.mxu0 %v4011_v22  ;;  %v1581_v30 = vld [vmem:[#allocation2 + $0x18] sm:$0xff] }
 0x1aa   : > { %3670 = vmatprep.subr.bf16.mxu0 %v4013_v58  ;;  %3529 = vmatmul.mubr.bf16.gmra.mrb[12].mxu1 %v4734_v18  ;;  %v1597_v63 = vpack.c.bf16 %v1582_v28, %v1581_v30 }
 0x1ab   : > { %3545 = vmatpush3.bf16.msra.mxu1 %v4016_v57  ;;  %3532 = vmatprep.mubr.bf16.mxu1 %v4740_v44 }
 0x1ac   : > { %3546 = vmatprep.subr.bf16.mxu1 %v4018_v56 }
 0x1ad   : > { %3671 = vmatpush3.bf16.msra.mxu0 %v4013_v58 }
 0x1ae   : > { %3672 = vmatprep.subr.bf16.mxu0 %v4015_v47 }
 0x1af   : > { %3547 = vmatpush3.bf16.msra.mxu1 %v4018_v56 }
 0x1b0   : > { %4086 = vmatmul.mubr.msk.bf16.gmra.mrb[24].mxu0 %vm4591_vm4, %v4708_v43  ;;  %3548 = vmatprep.subr.bf16.mxu1 %v4020_v59  ;;  %v4023_v43 = vld [vmem:[#allocation6 + $0x200] sm:$0xff]  }
 0x1b1   : > { %4090 = vmatprep.mubr.msk.bf16.mxu0 %vm4591_vm4, %v4089_v62  ;;  %3673 = vmatpush3.bf16.msra.mxu0 %v4015_v47 }
 0x1b2   : > { %3674 = vmatprep.subr.bf16.mxu0 %v4017_v60  ;;  %3533 = vmatmul.mubr.bf16.gmra.mrb[16].mxu1 %v4742_v34 }
 0x1b3   : > { %3549 = vmatpush3.bf16.msra.mxu1 %v4020_v59  ;;  %3552 = vmatprep.mubr.bf16.mxu1 %v1597_v63 }
 0x1b4   : > { %3550 = vmatprep.subr.bf16.mxu1 %v4022_v61 }
 0x1b5   : > { %3675 = vmatpush3.bf16.msra.mxu0 %v4017_v60 }
 0x1b6   : > { %3676 = vmatprep.subr.bf16.mxu0 %v4019_v0 }
 0x1b7   : > { %3551 = vmatpush3.bf16.msra.mxu1 %v4022_v61 }
 0x1b8   : > { %3661 = vmatmul.mubr.bf16.gmra.mrb[28].mxu0 %v2307_v6  ;;  %3728 = vmatprep.subr.bf16.mxu1 %v4023_v43 }
 0x1b9   : > { %3677 = vmatpush3.bf16.msra.mxu0 %v4019_v0  ;;  %3680 = vmatprep.mubr.bf16.mxu0 %v4627_v36  ;;  %v1601_v36 = vpack.c.bf16 %v1590_v20, %v1589_v23 }
 0x1ba   : > { %3678 = vmatprep.subr.bf16.mxu0 %v4021_v13  ;;  %3553 = vmatmul.mubr.bf16.vlgmr.msra.gmra.mrb[4].mxu1 %v1598_v8 }
 0x1bb   : > { %3736 = vmatpush3.bf16.msra.mxu1 %v4023_v43  ;;  %3556 = vmatprep.mubr.bf16.mxu1 %v1599_v14 }
 0x1bc   : > { %3729 = vmatprep.subr.bf16.mxu1 %v4024_v12 }
 0x1bd   : > { %3679 = vmatpush3.bf16.msra.mxu0 %v4021_v13 }
 0x1be   : > { %3696 = vmatprep.subr.bf16.mxu0 %v4023_v43 }
 0x1bf   : > { %3737 = vmatpush3.bf16.msra.mxu1 %v4024_v12 }
 0x1c0   : > { %3681 = vmatmul.mubr.bf16.vlgmr.msra.gmra.mrb[16].mxu0 %v4666_v10  ;;  %3730 = vmatprep.subr.bf16.mxu1 %v4025_v16  ;;  %v1591_v10 = vld [vmem:[#allocation2 + $0x90] sm:$0xff] }
 0x1c1   : > { %3684 = vmatprep.mubr.bf16.mxu0 %v4671_v17  ;;  %3697 = vmatpush3.bf16.msra.mxu0 %v4023_v43  ;;  %v1602_v1 = vpack.c.bf16 %v1592_v29, %v1591_v10  ;;  %v1603_v17 = vpack.c.bf16 %v4683_v26, %v1593_v15  ;;  %v2532_v26 = vld [vmem:[#allocation2 + $0xd9] sm:$0xff] }
 0x1c2   : > { %3698 = vmatprep.subr.bf16.mxu0 %v4024_v12  ;;  %3557 = vmatmul.mubr.bf16.gmra.mrb[8].mxu1 %v1600_v19 }
 0x1c3   : > { %3738 = vmatpush3.bf16.msra.mxu1 %v4025_v16  ;;  %3560 = vmatprep.mubr.bf16.mxu1 %v1601_v36 }
 0x1c4   : > { %3731 = vmatprep.subr.bf16.mxu1 %v4026_v25 }
 0x1c5   : > { %3699 = vmatpush3.bf16.msra.mxu0 %v4024_v12 }
 0x1c6   : > { %3700 = vmatprep.subr.bf16.mxu0 %v4025_v16 }
 0x1c7   : > { %3739 = vmatpush3.bf16.msra.mxu1 %v4026_v25 }
 0x1c8   : > { %3685 = vmatmul.mubr.bf16.gmra.mrb[20].mxu0 %v4701_v31  ;;  %3732 = vmatprep.subr.bf16.mxu1 %v4027_v27  ;;  %v1604_v31 = vpack.c.bf16 %v1596_v37, %v1595_v32 }
 0x1c9   : > { %3688 = vmatprep.mubr.bf16.mxu0 %v4704_v38  ;;  %3701 = vmatpush3.bf16.msra.mxu0 %v4025_v16  ;;  %v2533_v38 = vld [vmem:[#allocation2 + $0xe1] sm:$0xff] }
 0x1ca   : > { %3702 = vmatprep.subr.bf16.mxu0 %v4026_v25  ;;  %3561 = vmatmul.mubr.bf16.gmra.mrb[12].mxu1 %v1602_v1  ;;  %v2541_v40 = vpack.c.bf16 %v2533_v38, %v2532_v26 }
 0x1cb   : > { %3740 = vmatpush3.bf16.msra.mxu1 %v4027_v27  ;;  %3564 = vmatprep.mubr.bf16.mxu1 %v1603_v17 }
 0x1cc   : > { %3733 = vmatprep.subr.bf16.mxu1 %v4028_v33 }
 0x1cd   : > { %3703 = vmatpush3.bf16.msra.mxu0 %v4026_v25 }
 0x1ce   : > { %3704 = vmatprep.subr.bf16.mxu0 %v4027_v27 }
 0x1cf   : > { %3741 = vmatpush3.bf16.msra.mxu1 %v4028_v33 }
 0x1d0   : > { %3689 = vmatmul.mubr.bf16.gmra.mrb[24].mxu0 %v4713_v45  ;;  %3734 = vmatprep.subr.bf16.mxu1 %v4029_v35  ;;  %v2766_v45 = vld [vmem:[#allocation2 + $0xda] sm:$0xff] }
 0x1d1   : > { %3692 = vmatprep.mubr.bf16.mxu0 %v4716_v55  ;;  %3705 = vmatpush3.bf16.msra.mxu0 %v4027_v27  ;;  %v2767_v55 = vld [vmem:[#allocation2 + $0xe2] sm:$0xff] }
 0x1d2   : > { %3706 = vmatprep.subr.bf16.mxu0 %v4028_v33  ;;  %3565 = vmatmul.mubr.bf16.gmra.mrb[16].mxu1 %v1604_v31 }
 0x1d3   : > { %3742 = vmatpush3.bf16.msra.mxu1 %v4029_v35  ;;  %3720 = vmatprep.mubr.bf16.mxu1 %v4740_v44  ;;  %v2775_v44 = vpack.c.bf16 %v2767_v55, %v2766_v45 }
 0x1d4   : > { %3735 = vmatprep.subr.bf16.mxu1 %v4030_v39 }
 0x1d5   : > { %3707 = vmatpush3.bf16.msra.mxu0 %v4028_v33 }
 0x1d6   : > { %3708 = vmatprep.subr.bf16.mxu0 %v4029_v35 }
 0x1d7   : > { %3743 = vmatpush3.bf16.msra.mxu1 %v4030_v39 }
 0x1d8   : > { %3693 = vmatmul.mubr.bf16.gmra.mrb[28].mxu0 %v2541_v40 }
 0x1d9   : > { %3709 = vmatpush3.bf16.msra.mxu0 %v4029_v35  ;;  %3712 = vmatprep.mubr.bf16.mxu0 %v4724_v4 }
 0x1da   : > { %3710 = vmatprep.subr.bf16.mxu0 %v4030_v39  ;;  %3721 = vmatmul.mubr.bf16.vlgmr.msra.gmra.mrb[20].mxu1 %v4742_v34 }
 0x1db   : > { %3724 = vmatprep.mubr.bf16.mxu1 %v4747_v42 }
 0x1dd   : > { %3711 = vmatpush3.bf16.msra.mxu0 %v4030_v39 }
 0x1e0   : > { %3713 = vmatmul.mubr.bf16.vlgmr.msra.gmra.mrb[16].mxu0 %v4726_v5 }
 0x1e1   : > { %3716 = vmatprep.mubr.bf16.mxu0 %v4732_v48 }
 0x1e2   : > { %3725 = vmatmul.mubr.bf16.gmra.mrb[24].mxu1 %v2775_v44 }
 0x1e8   : > { %3717 = vmatmul.mubr.bf16.gmra.mrb[20].mxu0 %v4734_v18 }
 0x28d   : > { %v3554_v41 = vpop.f32.mrb[4].mxu1 }
 0x28e   : > { %v1704_v49 = vpop.f32.mrb[5].mxu1 }
 0x28f   : > { %v3555_v50 = vpop.f32.mrb[6].mxu1 }
 0x290   : > { %v1707_v4 = vpop.f32.mrb[7].mxu1 }
 0x295   : > { %v4794_v51 = vpop.f32.mrb[8].mxu1 }
 0x296   : > { %v4796_v34 = vpop.f32.mrb[9].mxu1 }
 0x297   : > { %v4798_v42 = vpop.f32.mrb[10].mxu1 }
 0x298   : > { %v4800_v52 = vpop.f32.mrb[11].mxu1 }
 0x29d   : > { %v3562_v53 = vpop.f32.mrb[12].mxu1 }
 0x29e   : > { %v1736_v5 = vpop.f32.mrb[13].mxu1 }
 0x29f   : > { %v3563_v54 = vpop.f32.mrb[14].mxu1 }
 0x2a0   : > { %v1739_v48 = vpop.f32.mrb[15].mxu1 }
 0x2a3   : > { %v3690_v22 = vpop.f32.mrb[24].mxu0 }
 0x2a4   : > { %v2673_v57 = vpop.f32.mrb[25].mxu0  ;;  %v3752_v18 = vadd.f32 %v3690_v22, %v3562_v53 }
 0x2a5   : > { %v3691_v58 = vpop.f32.mrb[26].mxu0  ;;  %v3754_v56 = vadd.f32 %v2673_v57, %v1736_v5  ;;  %v3566_v47 = vpop.f32.mrb[16].mxu1 }
 0x2a6   : > { %v2676_v59 = vpop.f32.mrb[27].mxu0  ;;  %v3756_v60 = vadd.f32 %v3691_v58, %v3563_v54  ;;  %v1752_v28 = vpop.f32.mrb[17].mxu1 }
 0x2a7   : > { %v3758_v30 = vadd.f32 %v2676_v59, %v1739_v48  ;;  %v3567_v61 = vpop.f32.mrb[18].mxu1 }
 0x2a8   : > { %v1755_v62 = vpop.f32.mrb[19].mxu1 }
 0x2ab   : > { %v3694_v63 = vpop.f32.mrb[28].mxu0 }
 0x2ac   : > { %v2689_v0 = vpop.f32.mrb[29].mxu0  ;;  %v3760_v3 = vadd.f32 %v3694_v63, %v3566_v47 }
 0x2ad   : > { %v3695_v46 = vpop.f32.mrb[30].mxu0  ;;  %v3762_v43 = vadd.f32 %v2689_v0, %v1752_v28  ;;  %v3722_v2 = vpop.f32.mrb[20].mxu1 }
 0x2ae   : > { %v2692_v6 = vpop.f32.mrb[31].mxu0  ;;  %v3764_v13 = vadd.f32 %v3695_v46, %v3567_v61  ;;  %v3753_v24 = vadd.f32 %v3752_v18, %v3722_v2  ;;  %v2907_v7 = vpop.f32.mrb[21].mxu1 }
 0x2af   : > { %v3766_v8 = vadd.f32 %v2692_v6, %v1755_v62  ;;  %v3755_v11 = vadd.f32 %v3754_v56, %v2907_v7  ;;  %v3723_v12 = vpop.f32.mrb[22].mxu1 }
 0x2b0   : > { %3013 = vst.msk [vmem:[%s4806_s20 + $0x50] sm:$0xff] %vm3002_vm5, %v3753_v24  ;;  %v3757_v14 = vadd.f32 %v3756_v60, %v3723_v12  ;;  %v2910_v16 = vpop.f32.mrb[23].mxu1 }
 0x2b1   : > { %3011 = vst.msk [vmem:[%s4806_s20 + $0x40] sm:$0xff] %vm3002_vm5, %v3755_v11  ;;  %v3759_v9 = vadd.f32 %v3758_v30, %v2910_v16 }
 0x2b2   : > { %3014 = vst.msk [vmem:[%s4806_s20 + $0x58] sm:$0xff] %vm3002_vm5, %v3757_v14 }
 0x2b3   : > { %v3714_v20 = vpop.f32.mrb[16].mxu0  ;;  %3012 = vst.msk [vmem:[%s4806_s20 + $0x48] sm:$0xff] %vm3002_vm5, %v3759_v9 }
 0x2b4   : > { %v3744_v21 = vadd.f32 %v3714_v20, %v3554_v41  ;;  %v2875_v19 = vpop.f32.mrb[17].mxu0 }
 0x2b5   : > { %v3745_v23 = vadd.f32 %v2875_v19, %v1704_v49  ;;  %v3715_v25 = vpop.f32.mrb[18].mxu0  ;;  %v3726_v36 = vpop.f32.mrb[24].mxu1 }
 0x2b6   : > { %3005 = vst.msk [vmem:[%s4806_s20 + $0x10] sm:$0xff] %vm3002_vm5, %v3744_v21  ;;  %v3746_v27 = vadd.f32 %v3715_v25, %v3555_v50  ;;  %v2878_v29 = vpop.f32.mrb[19].mxu0  ;;  %v3761_v15 = vadd.f32 %v3760_v3, %v3726_v36  ;;  %v2923_v10 = vpop.f32.mrb[25].mxu1 }
 0x2b7   : > { %3003 = vst.msk [vmem:[%s4806_s20] sm:$0xff] %vm3002_vm5, %v3745_v23  ;;  %v3747_v1 = vadd.f32 %v2878_v29, %v1707_v4  ;;  %v3763_v33 = vadd.f32 %v3762_v43, %v2923_v10  ;;  %v3727_v17 = vpop.f32.mrb[26].mxu1 }
 0x2b8   : > { %3006 = vst.msk [vmem:[%s4806_s20 + $0x18] sm:$0xff] %vm3002_vm5, %v3746_v27  ;;  %3017 = vst.msk [vmem:[%s4806_s20 + $0x70] sm:$0xff] %vm3002_vm5, %v3761_v15  ;;  %v3765_v35 = vadd.f32 %v3764_v13, %v3727_v17  ;;  %v2926_v37 = vpop.f32.mrb[27].mxu1 }
 0x2b9   : > { %3004 = vst.msk [vmem:[%s4806_s20 + $0x8] sm:$0xff] %vm3002_vm5, %v3747_v1  ;;  %3015 = vst.msk [vmem:[%s4806_s20 + $0x60] sm:$0xff] %vm3002_vm5, %v3763_v33  ;;  %v3767_v32 = vadd.f32 %v3766_v8, %v2926_v37 }
 0x2ba   : > { %3018 = vst.msk [vmem:[%s4806_s20 + $0x78] sm:$0xff] %vm3002_vm5, %v3765_v35 }
 0x2bb   : > { %v3718_v31 = vpop.f32.mrb[20].mxu0  ;;  %3016 = vst.msk [vmem:[%s4806_s20 + $0x68] sm:$0xff] %vm3002_vm5, %v3767_v32 }
 0x2bc   : > { %v3748_v39 = vadd.f32 %v3718_v31, %v4794_v51  ;;  %v2891_v26 = vpop.f32.mrb[21].mxu0 }
 0x2bd   : > { %v3749_v38 = vadd.f32 %v2891_v26, %v4796_v34  ;;  %v3719_v40 = vpop.f32.mrb[22].mxu0 }
 0x2be   : > { %3009 = vst.msk [vmem:[%s4806_s20 + $0x30] sm:$0xff] %vm3002_vm5, %v3748_v39  ;;  %v3750_v45 = vadd.f32 %v3719_v40, %v4798_v42  ;;  %v2894_v55 = vpop.f32.mrb[23].mxu0 }
 0x2bf   : > { %3007 = vst.msk [vmem:[%s4806_s20 + $0x20] sm:$0xff] %vm3002_vm5, %v3749_v38  ;;  %v3751_v44 = vadd.f32 %v2894_v55, %v4800_v52 }
 0x2c0   : > { %3010 = vst.msk [vmem:[%s4806_s20 + $0x38] sm:$0xff] %vm3002_vm5, %v3750_v45 }
 0x2c1   : > { %3008 = vst.msk [vmem:[%s4806_s20 + $0x28] sm:$0xff] %vm3002_vm5, %v3751_v44 }
 0x2c2 PF: > { %s22_s12 = sadd.s32 1, %s4219_s12   ;;  %s4906_s7 = sld [smem:[#allocation10_spill]] }
 0x2c3   : > { %p19_p8 = scmp.ge.s32.totalorder %s22_s12, 6   ;;  %s4907_s27 = smov %s4195_s28 }
 0x2c4   : > { %s4908_s28 = smov %s4199_s29  ;;  %s4909_s29 = smov %s4377_s8 }
 0x2c5   : > { %s4910_s30 = smov %s4211_s10  ;;  %s4911_s9 = smov %s4215_s11 }
 0x2c6   : > { %s4913_s11 = smov %s4919_s23  ;;  %21 = sbr.rel (!%p19_p8) target bundleno = 13 (0xd), region = 110 }
 0x2c8   : > { %s4912_s10 = smov %s4906_s7 }
 0x2cd   :  { %3048 = vsyncpa [#allocation5], 1 }
 0x2ce   :  { %3050 = vsyncpa [#allocation5 + $0x1], 1 }
 0x2cf   :  { %3051 = vsyncpa [#allocation7], 1 }

</bundles_post_ra>
